<compile_context>
chip_gen: v7x
topology: tpu7x:2x2x1
jax: 0.10.0
libtpu: 0.0.40
codegen_flags: <defaults>
</compile_context>

<pallas_src>
import functools

import jax
import jax.numpy as jnp
from jax.experimental import pallas as pl
from jax.experimental.pallas import tpu as pltpu


# ----------------------------------------------------------------------------
# Chip-dependent tuning knobs (per-generation VMEM budget / block size)
# ----------------------------------------------------------------------------
def _device_kind():
    try:
        return jax.devices()[0].device_kind.lower()
    except Exception:  # defensive: fall back to generic settings
        return ""


def _vmem_limit_bytes():
    kind = _device_kind()
    if "v7" in kind:
        # 64 MiB physical per TensorCore: leave headroom for Mosaic internal
        # scratch and the double-buffered I/O blocks.
        return 48 * 1024 * 1024
    if "v5" in kind or "v6" in kind:
        # 128 MiB physical: plenty of headroom, keep all weights resident.
        return 100 * 1024 * 1024
    return None  # unknown generation -> leave the Mosaic default


def _pick_block_b(batch, seq):
    """Batch elements per grid step (must divide `batch`)."""
    kind = _device_kind()
    target_rows = 512 if "v6" in kind else 256   # taller M tiles on v6e
    bb = min(batch, max(1, target_rows // max(seq, 1)))
    while batch % bb:
        bb -= 1
    bb = max(bb, 1)
    if "v7" in kind and batch >= 2:
        # v7x has 2 TensorCores: make sure the parallel grid axis has >= 2
        # steps so the second core is not idle.
        while batch // bb < 2 and bb > 1:
            bb = max(1, bb // 2)
            while batch % bb:
                bb -= 1
    return max(bb, 1)


# ----------------------------------------------------------------------------
# Pallas kernel: one pre-LN encoder layer (optionally fused with the final
# mean-pool over the sequence axis when `pool=True`, i.e. the last layer).
# ----------------------------------------------------------------------------
def encoder_layer_kernel(
        x_ref,                               # (Bb*T, E) f32 activations
        wqkv_ref,                            # (E, 3E)   bf16 (q cols pre-scaled)
        wd_ref, bd_ref,                      # (E, E) bf16, (1, E) f32
        w1_ref, b1_ref,                      # (E, 4E) bf16, (1, 4E) f32
        w2_ref, b2_ref,                      # (4E, E) bf16, (1, E) f32
        g1_ref, be1_ref, g2_ref, be2_ref,    # (1, E) f32 LayerNorm affine params
        out_ref,                             # (Bb*T, E) f32, or (Bb, 1, E) if pool
        attn_ref,                            # (Bb, T, T) f32 head-0 attention map
        *, num_heads, depth, block_b, seq_len, pool):
    H, D = num_heads, depth
    bb, T = block_b, seq_len
    NT, E = x_ref.shape

    x = x_ref[...]                                            # (NT, E) f32

    # --- LayerNorm 1 (eps=1e-5, biased variance — matches nn.LayerNorm) ---
    mu = jnp.mean(x, axis=-1, keepdims=True)
    var = jnp.mean(jnp.square(x - mu), axis=-1, keepdims=True)
    xn = (x - mu) * jax.lax.rsqrt(var + 1e-5) * g1_ref[...] + be1_ref[...]
    xnb = xn.astype(jnp.bfloat16)

    # --- Fused QKV projection: ONE MXU matmul with N = 3E, f32 accumulation.
    #     The 1/sqrt(D) score scale is already folded into the q columns.  ---
    qkv = jnp.dot(xnb, wqkv_ref[...], preferred_element_type=jnp.float32)
    q3 = qkv[:, :E].reshape(bb, T, E).astype(jnp.bfloat16)
    k3 = qkv[:, E:2 * E].reshape(bb, T, E).astype(jnp.bfloat16)
    v3 = qkv[:, 2 * E:].reshape(bb, T, E).astype(jnp.bfloat16)

    # --- Multi-head self-attention (src_mask=None) ---
    # Static loop over heads; each head is a batched (leading dim = Bb) 3-D
    # einsum.  Per-head PV results are gathered and concatenated ONCE along
    # the lane axis — no VMEM scratch slab, no per-head masked scatter stores.
    head_outs = []
    for h in range(H):
        sl = slice(h * D, (h + 1) * D)
        s = jnp.einsum("bqd,bkd->bqk", q3[:, :, sl], k3[:, :, sl],
                       preferred_element_type=jnp.float32)      # (Bb, T, T) f32
        s = s - jnp.max(s, axis=-1, keepdims=True)
        e = jnp.exp(s)
        a = e * (1.0 / jnp.sum(e, axis=-1, keepdims=True))       # exact softmax
        if h == 0:
            attn_ref[...] = a          # attention_weights[:, 0, :, :]
        head_outs.append(jnp.einsum("bqk,bkd->bqd", a.astype(jnp.bfloat16),
                                    v3[:, :, sl],
                                    preferred_element_type=jnp.float32))
    heads = jnp.concatenate(head_outs, axis=-1).reshape(NT, E)   # (NT, E) f32

    attn_out = (jnp.dot(heads.astype(jnp.bfloat16), wd_ref[...],
                        preferred_element_type=jnp.float32) + bd_ref[...])
    h1 = x + attn_out                                           # residual 1

    # --- LayerNorm 2 ---
    mu2 = jnp.mean(h1, axis=-1, keepdims=True)
    var2 = jnp.mean(jnp.square(h1 - mu2), axis=-1, keepdims=True)
    hn = (h1 - mu2) * jax.lax.rsqrt(var2 + 1e-5) * g2_ref[...] + be2_ref[...]

    # --- Positionwise FFN (weights are resident constant-index VMEM blocks) ---
    ff = jnp.dot(hn.astype(jnp.bfloat16), w1_ref[...],
                 preferred_element_type=jnp.float32) + b1_ref[...]
    ff = jnp.maximum(ff, 0.0)                                   # ReLU in f32
    ff = jnp.dot(ff.astype(jnp.bfloat16), w2_ref[...],
                 preferred_element_type=jnp.float32) + b2_ref[...]

    y = h1 + ff                                                 # residual 2
    if pool:
        # Fused final mean over the sequence axis -> (Bb, 1, E).
        out_ref[...] = jnp.mean(y.reshape(bb, T, E), axis=1, keepdims=True)
    else:
        out_ref[...] = y


# ----------------------------------------------------------------------------
# Wrappers
# ----------------------------------------------------------------------------
def run_encoder_layer(x2d, lp, num_heads, *, batch, seq, last):
    BT, E = x2d.shape
    assert BT == batch * seq
    depth = E // num_heads
    d_ff = lp["w1"].shape[1]
    bb = _pick_block_b(batch, seq)
    grid = (batch // bb,)

    kernel = functools.partial(encoder_layer_kernel, num_heads=num_heads,
                               depth=depth, block_b=bb, seq_len=seq, pool=last)

    def const_spec(shape):        # whole-array operand, same block every step
        return pl.BlockSpec(shape, lambda b: (0,) * len(shape))

    in_specs = [
        pl.BlockSpec((bb * seq, E), lambda b: (b, 0)),            # x (batch block)
        const_spec((E, 3 * E)),                                   # packed wqkv
        const_spec((E, E)), const_spec((1, E)),                   # wd, bd
        const_spec((E, d_ff)), const_spec((1, d_ff)),             # w1, b1
        const_spec((d_ff, E)), const_spec((1, E)),                # w2, b2
        const_spec((1, E)), const_spec((1, E)),                   # gamma1, beta1
        const_spec((1, E)), const_spec((1, E)),                   # gamma2, beta2
    ]
    if last:
        out_specs = [pl.BlockSpec((bb, 1, E), lambda b: (b, 0, 0)),
                     pl.BlockSpec((bb, seq, seq), lambda b: (b, 0, 0))]
        out_shape = (jax.ShapeDtypeStruct((batch, 1, E), jnp.float32),
                     jax.ShapeDtypeStruct((batch, seq, seq), jnp.float32))
    else:
        out_specs = [pl.BlockSpec((bb * seq, E), lambda b: (b, 0)),
                     pl.BlockSpec((bb, seq, seq), lambda b: (b, 0, 0))]
        out_shape = (jax.ShapeDtypeStruct((batch * seq, E), jnp.float32),
                     jax.ShapeDtypeStruct((batch, seq, seq), jnp.float32))

    grid_spec = pltpu.PrefetchScalarGridSpec(
        num_scalar_prefetch=0, grid=grid,
        in_specs=in_specs, out_specs=out_specs)

    cp = dict(dimension_semantics=("parallel",))      # batch blocks -> megacore
    vmem = _vmem_limit_bytes()
    if vmem is not None:
        cp["vmem_limit_bytes"] = vmem

    out, attn = pl.pallas_call(
        kernel,
        grid_spec=grid_spec,
        out_shape=out_shape,
        compiler_params=pltpu.CompilerParams(**cp),
    )(x2d,
      lp["wqkv"], lp["wd"], lp["bd"],
      lp["w1"], lp["b1"], lp["w2"], lp["b2"],
      lp["g1"], lp["be1"], lp["g2"], lp["be2"])
    return out, attn


def transformer_encoder_forward(params, tokens, n_head):
    B, T = tokens.shape
    E = params["embed"].shape[1]
    # Glue: embedding gather + positional embedding add in plain JAX.
    x = params["embed"][tokens] + params["pos"][:, :T, :]          # (B, T, E)
    x = x.reshape(B * T, E)                                        # token-major flat
    attn_maps = []
    n_layers = len(params["layers"])
    if n_layers == 0:
        return x.reshape(B, T, E).mean(axis=1), attn_maps
    for i, lp in enumerate(params["layers"]):
        last = i == n_layers - 1
        x, a = run_encoder_layer(x, lp, n_head, batch=B, seq=T, last=last)
        attn_maps.append(a)
    out = x.reshape(B, E)   # last layer emitted the fused (B, 1, E) mean-pool
    return out, attn_maps


# ----------------------------------------------------------------------------
# Parameter prep: pack QKV, fold the 1/sqrt(D) scale into the q columns and
# pre-cast every matmul weight to bf16 ONCE (outside the jitted forward).
# ----------------------------------------------------------------------------
def prepare_params(params, n_head):
    E = params["embed"].shape[1]
    D = E // n_head
    inv_scale = 1.0 / jnp.sqrt(jnp.float32(D))
    prepared = {"embed": params["embed"], "pos": params["pos"], "layers": []}
    for lp in params["layers"]:
        wqkv = jnp.concatenate(
            [lp["wq_t"] * inv_scale, lp["wk_t"], lp["wv_t"]], axis=1
        ).astype(jnp.bfloat16)                                  # (E, 3E)
        prepared["layers"].append({
            "wqkv": wqkv,
            "wd": lp["wd_t"].astype(jnp.bfloat16), "bd": lp["bd"],
            "w1": lp["w1_t"].astype(jnp.bfloat16), "b1": lp["b1"],
            "w2": lp["w2_t"].astype(jnp.bfloat16), "b2": lp["b2"],
            "g1": lp["g1"], "be1": lp["be1"], "g2": lp["g2"], "be2": lp["be2"],
        })
    return prepared


# ----------------------------------------------------------------------------
# Deterministic parameter init (shapes from the PyTorch __init__)
# ----------------------------------------------------------------------------
def init_params(key, vocab_size, n_embd, n_head, n_layer, block_size):
    d_ff = 4 * n_embd
    keys = jax.random.split(key, 2 + n_layer)
    params = {
        "embed": 0.02 * jax.random.normal(keys[0], (vocab_size, n_embd), jnp.float32),
        "pos":   0.02 * jax.random.normal(keys[1], (1, block_size, n_embd), jnp.float32),
        "layers": [],
    }

    def linear_w_t(k, fan_in, fan_out):
        # PyTorch Linear weight is (out, in); we store the transpose (in, out)
        # so kernels compute y = x @ W_t  ==  x @ W.T
        bound = 1.0 / jnp.sqrt(jnp.float32(fan_in))
        w = jax.random.uniform(k, (fan_out, fan_in), jnp.float32, -bound, bound)
        return w.T

    def bias(k, fan_in, fan_out):
        bound = 1.0 / jnp.sqrt(jnp.float32(fan_in))
        return jax.random.uniform(k, (1, fan_out), jnp.float32, -bound, bound)

    for l in range(n_layer):
        k = jax.random.split(keys[2 + l], 8)
        lp = {
            "wq_t": linear_w_t(k[0], n_embd, n_embd),
            "wk_t": linear_w_t(k[1], n_embd, n_embd),
            "wv_t": linear_w_t(k[2], n_embd, n_embd),
            "wd_t": linear_w_t(k[3], n_embd, n_embd),
            "bd":   bias(k[4], n_embd, n_embd),
            "w1_t": linear_w_t(k[5], n_embd, d_ff),
            "b1":   bias(k[6], n_embd, d_ff),
            "w2_t": linear_w_t(k[7], d_ff, n_embd),
            "b2":   jnp.zeros((1, n_embd), jnp.float32),
            "g1":   jnp.ones((1, n_embd), jnp.float32),
            "be1":  jnp.zeros((1, n_embd), jnp.float32),
            "g2":   jnp.ones((1, n_embd), jnp.float32),
            "be2":  jnp.zeros((1, n_embd), jnp.float32),
        }
        params["layers"].append(lp)
    return params


# ----------------------------------------------------------------------------
# Pure-JAX f32 reference (mirrors the PyTorch forward exactly, [B,T,E] layout)
# ----------------------------------------------------------------------------
def _ref_ln(x, g, b):
    mu = x.mean(-1, keepdims=True)
    var = ((x - mu) ** 2).mean(-1, keepdims=True)
    return (x - mu) / jnp.sqrt(var + 1e-5) * g + b


def ref_forward(params, tokens, n_head):
    x = params["embed"][tokens] + params["pos"][:, :tokens.shape[1], :]
    B, T, E = x.shape
    D = E // n_head
    attn_maps = []
    for lp in params["layers"]:
        xn = _ref_ln(x, lp["g1"], lp["be1"])
        q = xn @ lp["wq_t"]
        k = xn @ lp["wk_t"]
        v = xn @ lp["wv_t"]
        split = lambda t: t.reshape(B, T, n_head, D).transpose(0, 2, 1, 3)
        qh, kh, vh = split(q), split(k), split(v)
        s = jnp.einsum("bhqd,bhkd->bhqk", qh, kh) / jnp.sqrt(jnp.float32(D))
        a = jax.nn.softmax(s, axis=-1)
        o = jnp.einsum("bhqk,bhkd->bhqd", a, vh).transpose(0, 2, 1, 3).reshape(B, T, E)
        o = o @ lp["wd_t"] + lp["bd"]
        x = x + o
        attn_maps.append(a[:, 0])
        xn2 = _ref_ln(x, lp["g2"], lp["be2"])
        ff = jnp.maximum(xn2 @ lp["w1_t"] + lp["b1"], 0.0)
        ff = ff @ lp["w2_t"] + lp["b2"]
        x = x + ff
    return x.mean(axis=1), attn_maps


# ----------------------------------------------------------------------------
if __name__ == "__main__":
    vocab_size, n_embd, n_head, n_layer, block_size = 16, 32, 4, 2, 8
    B, T = 2, 8

    key = jax.random.PRNGKey(0)
    pkey, tkey = jax.random.split(key)
    params = init_params(pkey, vocab_size, n_embd, n_head, n_layer, block_size)
    tokens = jax.random.randint(tkey, (B, T), 0, vocab_size, dtype=jnp.int32)

    kparams = prepare_params(params, n_head)   # bf16 pack + scale fold, once
    fwd = jax.jit(functools.partial(transformer_encoder_forward, n_head=n_head))
    out, attn_maps = fwd(kparams, tokens)
    out = jax.block_until_ready(out)
    attn_maps = [jax.block_until_ready(a) for a in attn_maps]

    # correctness check against pure-JAX f32 reference (kernel uses bf16
    # matmul operands, hence the relaxed tolerance)
    ref_out, ref_maps = ref_forward(params, tokens, n_head)
    assert out.shape == (B, n_embd)
    assert all(a.shape == (B, T, T) for a in attn_maps)
    assert jnp.allclose(out, ref_out, atol=2e-2, rtol=2e-2), (
        "out max err", float(jnp.max(jnp.abs(out - ref_out))))
    for a, r in zip(attn_maps, ref_maps):
        assert jnp.allclose(a, r, atol=1e-2, rtol=1e-2), (
            "attn max err", float(jnp.max(jnp.abs(a - r))))

    print("KERNEL_OK")
</pallas_src>

<mosaic_0001>
module attributes {stable_mosaic.version = 11 : i64} {
  func.func @encoder_layer_kernel(%arg0: i32, %arg1: memref<16x32xf32, #tpu.memory_space<vmem>>, %arg2: memref<32x96xbf16, #tpu.memory_space<vmem>>, %arg3: memref<32x32xbf16, #tpu.memory_space<vmem>>, %arg4: memref<1x32xf32, #tpu.memory_space<vmem>>, %arg5: memref<32x128xbf16, #tpu.memory_space<vmem>>, %arg6: memref<1x128xf32, #tpu.memory_space<vmem>>, %arg7: memref<128x32xbf16, #tpu.memory_space<vmem>>, %arg8: memref<1x32xf32, #tpu.memory_space<vmem>>, %arg9: memref<1x32xf32, #tpu.memory_space<vmem>>, %arg10: memref<1x32xf32, #tpu.memory_space<vmem>>, %arg11: memref<1x32xf32, #tpu.memory_space<vmem>>, %arg12: memref<1x32xf32, #tpu.memory_space<vmem>>, %arg13: memref<2x1x32xf32, #tpu.memory_space<vmem>>, %arg14: memref<2x8x8xf32, #tpu.memory_space<vmem>>) attributes {dimension_semantics = [#tpu.dimension_semantics<parallel>], iteration_bounds = array<i64: 1>, scalar_prefetch = 0 : i64, scratch_operands = 0 : i64, tpu.core_type = #tpu.core_type<tc>, window_params = [{transform_indices = @transform_0, window_bounds = array<i64: 16, 32>}, {pipeline_mode = #tpu.pipeline_mode<synchronous>, transform_indices = @transform_1, window_bounds = array<i64: 32, 96>}, {pipeline_mode = #tpu.pipeline_mode<synchronous>, transform_indices = @transform_2, window_bounds = array<i64: 32, 32>}, {pipeline_mode = #tpu.pipeline_mode<synchronous>, transform_indices = @transform_3, window_bounds = array<i64: 1, 32>}, {pipeline_mode = #tpu.pipeline_mode<synchronous>, transform_indices = @transform_4, window_bounds = array<i64: 32, 128>}, {pipeline_mode = #tpu.pipeline_mode<synchronous>, transform_indices = @transform_5, window_bounds = array<i64: 1, 128>}, {pipeline_mode = #tpu.pipeline_mode<synchronous>, transform_indices = @transform_6, window_bounds = array<i64: 128, 32>}, {pipeline_mode = #tpu.pipeline_mode<synchronous>, transform_indices = @transform_7, window_bounds = array<i64: 1, 32>}, {pipeline_mode = #tpu.pipeline_mode<synchronous>, transform_indices = @transform_8, window_bounds = array<i64: 1, 32>}, {pipeline_mode = #tpu.pipeline_mode<synchronous>, transform_indices = @transform_9, window_bounds = array<i64: 1, 32>}, {pipeline_mode = #tpu.pipeline_mode<synchronous>, transform_indices = @transform_10, window_bounds = array<i64: 1, 32>}, {pipeline_mode = #tpu.pipeline_mode<synchronous>, transform_indices = @transform_11, window_bounds = array<i64: 1, 32>}, {transform_indices = @transform_12, window_bounds = array<i64: 2, 1, 32>}, {transform_indices = @transform_13, window_bounds = array<i64: 2, 8, 8>}]} {
    %c0 = arith.constant 0 : index
    %c0_0 = arith.constant 0 : index
    %0 = vector.load %arg1[%c0, %c0_0] : memref<16x32xf32, #tpu.memory_space<vmem>>, vector<16x32xf32>
    %cst = arith.constant dense<0.000000e+00> : vector<16xf32>
    %1 = vector.multi_reduction <add>, %0, %cst [1] : vector<16x32xf32> to vector<16xf32>
    %2 = vector.shape_cast %1 : vector<16xf32> to vector<16x1xf32>
    %cst_1 = arith.constant 3.200000e+01 : f32
    %3 = vector.broadcast %cst_1 : f32 to vector<16x1xf32>
    %4 = arith.divf %2, %3 : vector<16x1xf32>
    %5 = vector.broadcast %4 : vector<16x1xf32> to vector<16x32xf32>
    %6 = arith.subf %0, %5 : vector<16x32xf32>
    %7 = arith.mulf %6, %6 : vector<16x32xf32>
    %cst_2 = arith.constant dense<0.000000e+00> : vector<16xf32>
    %8 = vector.multi_reduction <add>, %7, %cst_2 [1] : vector<16x32xf32> to vector<16xf32>
    %9 = vector.shape_cast %8 : vector<16xf32> to vector<16x1xf32>
    %cst_3 = arith.constant 3.200000e+01 : f32
    %10 = vector.broadcast %cst_3 : f32 to vector<16x1xf32>
    %11 = arith.divf %9, %10 : vector<16x1xf32>
    %12 = vector.broadcast %4 : vector<16x1xf32> to vector<16x32xf32>
    %13 = arith.subf %0, %12 : vector<16x32xf32>
    %cst_4 = arith.constant 9.99999974E-6 : f32
    %14 = vector.broadcast %cst_4 : f32 to vector<16x1xf32>
    %15 = arith.addf %11, %14 : vector<16x1xf32>
    %16 = math.rsqrt %15 : vector<16x1xf32>
    %17 = vector.broadcast %16 : vector<16x1xf32> to vector<16x32xf32>
    %18 = arith.mulf %13, %17 : vector<16x32xf32>
    %c0_5 = arith.constant 0 : index
    %c0_6 = arith.constant 0 : index
    %19 = vector.load %arg9[%c0_5, %c0_6] : memref<1x32xf32, #tpu.memory_space<vmem>>, vector<1x32xf32>
    %20 = vector.broadcast %19 : vector<1x32xf32> to vector<16x32xf32>
    %21 = arith.mulf %18, %20 : vector<16x32xf32>
    %c0_7 = arith.constant 0 : index
    %c0_8 = arith.constant 0 : index
    %22 = vector.load %arg10[%c0_7, %c0_8] : memref<1x32xf32, #tpu.memory_space<vmem>>, vector<1x32xf32>
    %23 = vector.broadcast %22 : vector<1x32xf32> to vector<16x32xf32>
    %24 = arith.addf %21, %23 : vector<16x32xf32>
    %25 = arith.truncf %24 : vector<16x32xf32> to vector<16x32xbf16>
    %c0_9 = arith.constant 0 : index
    %c0_10 = arith.constant 0 : index
    %26 = vector.load %arg2[%c0_9, %c0_10] : memref<32x96xbf16, #tpu.memory_space<vmem>>, vector<32x96xbf16>
    %cst_11 = arith.constant dense<0.000000e+00> : vector<16x96xf32>
    %27 = tpu.matmul %25, %26, %cst_11 {dimension_numbers = #tpu.dot_dimension_numbers<[1], [0], [0], [1], [0, 0, 1, 1], [], []>} : vector<16x32xbf16>, vector<32x96xbf16>, vector<16x96xf32> -> vector<16x96xf32>
    %28 = vector.extract_strided_slice %27 {offsets = [0, 0], sizes = [16, 32], strides = [1, 1]} : vector<16x96xf32> to vector<16x32xf32>
    %29 = vector.shape_cast %28 : vector<16x32xf32> to vector<2x8x32xf32>
    %30 = arith.truncf %29 : vector<2x8x32xf32> to vector<2x8x32xbf16>
    %31 = vector.extract_strided_slice %27 {offsets = [0, 32], sizes = [16, 32], strides = [1, 1]} : vector<16x96xf32> to vector<16x32xf32>
    %32 = vector.shape_cast %31 : vector<16x32xf32> to vector<2x8x32xf32>
    %33 = arith.truncf %32 : vector<2x8x32xf32> to vector<2x8x32xbf16>
    %34 = vector.extract_strided_slice %27 {offsets = [0, 64], sizes = [16, 32], strides = [1, 1]} : vector<16x96xf32> to vector<16x32xf32>
    %35 = vector.shape_cast %34 : vector<16x32xf32> to vector<2x8x32xf32>
    %36 = arith.truncf %35 : vector<2x8x32xf32> to vector<2x8x32xbf16>
    %37 = vector.extract_strided_slice %30 {offsets = [0, 0, 0], sizes = [2, 8, 8], strides = [1, 1, 1]} : vector<2x8x32xbf16> to vector<2x8x8xbf16>
    %38 = vector.extract_strided_slice %33 {offsets = [0, 0, 0], sizes = [2, 8, 8], strides = [1, 1, 1]} : vector<2x8x32xbf16> to vector<2x8x8xbf16>
    "tpu.trace_start"() <{level = 10 : i32, message = "bqd,bkd->bqk"}> : () -> ()
    %cst_12 = arith.constant dense<0.000000e+00> : vector<2x8x8xf32>
    %39 = tpu.matmul %37, %38, %cst_12 {dimension_numbers = #tpu.dot_dimension_numbers<[2], [2], [1], [1], [0, 0, 0, 1, 1, 1], [0], [0]>} : vector<2x8x8xbf16>, vector<2x8x8xbf16>, vector<2x8x8xf32> -> vector<2x8x8xf32>
    "tpu.trace_stop"() : () -> ()
    %cst_13 = arith.constant dense<0xFF800000> : vector<2x8xf32>
    %40 = vector.multi_reduction <maximumf>, %39, %cst_13 [2] : vector<2x8x8xf32> to vector<2x8xf32>
    %41 = vector.shape_cast %40 : vector<2x8xf32> to vector<2x8x1xf32>
    %42 = vector.broadcast %41 : vector<2x8x1xf32> to vector<2x8x8xf32>
    %43 = arith.subf %39, %42 : vector<2x8x8xf32>
    %44 = math.exp %43 : vector<2x8x8xf32>
    %cst_14 = arith.constant dense<0.000000e+00> : vector<2x8xf32>
    %45 = vector.multi_reduction <add>, %44, %cst_14 [2] : vector<2x8x8xf32> to vector<2x8xf32>
    %46 = vector.shape_cast %45 : vector<2x8xf32> to vector<2x8x1xf32>
    %cst_15 = arith.constant 1.000000e+00 : f32
    %47 = vector.broadcast %cst_15 : f32 to vector<2x8x1xf32>
    %48 = arith.divf %47, %46 : vector<2x8x1xf32>
    %49 = vector.broadcast %48 : vector<2x8x1xf32> to vector<2x8x8xf32>
    %50 = arith.mulf %44, %49 : vector<2x8x8xf32>
    %c0_16 = arith.constant 0 : index
    %c0_17 = arith.constant 0 : index
    %c0_18 = arith.constant 0 : index
    %51 = vector.load %arg14[%c0_16, %c0_17, %c0_18] : memref<2x8x8xf32, #tpu.memory_space<vmem>>, vector<2x8x8xf32>
    tpu.vector_store %arg14[%c0_16, %c0_17, %c0_18], %50 {strides = array<i32>} : memref<2x8x8xf32, #tpu.memory_space<vmem>>, vector<2x8x8xf32>,
    %52 = arith.truncf %50 : vector<2x8x8xf32> to vector<2x8x8xbf16>
    %53 = vector.extract_strided_slice %36 {offsets = [0, 0, 0], sizes = [2, 8, 8], strides = [1, 1, 1]} : vector<2x8x32xbf16> to vector<2x8x8xbf16>
    "tpu.trace_start"() <{level = 10 : i32, message = "bqk,bkd->bqd"}> : () -> ()
    %cst_19 = arith.constant dense<0.000000e+00> : vector<2x8x8xf32>
    %54 = tpu.matmul %52, %53, %cst_19 {dimension_numbers = #tpu.dot_dimension_numbers<[2], [1], [1], [2], [0, 0, 0, 1, 1, 2], [0], [0]>} : vector<2x8x8xbf16>, vector<2x8x8xbf16>, vector<2x8x8xf32> -> vector<2x8x8xf32>
    "tpu.trace_stop"() : () -> ()
    %55 = vector.extract_strided_slice %30 {offsets = [0, 0, 8], sizes = [2, 8, 8], strides = [1, 1, 1]} : vector<2x8x32xbf16> to vector<2x8x8xbf16>
    %56 = vector.extract_strided_slice %33 {offsets = [0, 0, 8], sizes = [2, 8, 8], strides = [1, 1, 1]} : vector<2x8x32xbf16> to vector<2x8x8xbf16>
    "tpu.trace_start"() <{level = 10 : i32, message = "bqd,bkd->bqk"}> : () -> ()
    %cst_20 = arith.constant dense<0.000000e+00> : vector<2x8x8xf32>
    %57 = tpu.matmul %55, %56, %cst_20 {dimension_numbers = #tpu.dot_dimension_numbers<[2], [2], [1], [1], [0, 0, 0, 1, 1, 1], [0], [0]>} : vector<2x8x8xbf16>, vector<2x8x8xbf16>, vector<2x8x8xf32> -> vector<2x8x8xf32>
    "tpu.trace_stop"() : () -> ()
    %cst_21 = arith.constant dense<0xFF800000> : vector<2x8xf32>
    %58 = vector.multi_reduction <maximumf>, %57, %cst_21 [2] : vector<2x8x8xf32> to vector<2x8xf32>
    %59 = vector.shape_cast %58 : vector<2x8xf32> to vector<2x8x1xf32>
    %60 = vector.broadcast %59 : vector<2x8x1xf32> to vector<2x8x8xf32>
    %61 = arith.subf %57, %60 : vector<2x8x8xf32>
    %62 = math.exp %61 : vector<2x8x8xf32>
    %cst_22 = arith.constant dense<0.000000e+00> : vector<2x8xf32>
    %63 = vector.multi_reduction <add>, %62, %cst_22 [2] : vector<2x8x8xf32> to vector<2x8xf32>
    %64 = vector.shape_cast %63 : vector<2x8xf32> to vector<2x8x1xf32>
    %cst_23 = arith.constant 1.000000e+00 : f32
    %65 = vector.broadcast %cst_23 : f32 to vector<2x8x1xf32>
    %66 = arith.divf %65, %64 : vector<2x8x1xf32>
    %67 = vector.broadcast %66 : vector<2x8x1xf32> to vector<2x8x8xf32>
    %68 = arith.mulf %62, %67 : vector<2x8x8xf32>
    %69 = arith.truncf %68 : vector<2x8x8xf32> to vector<2x8x8xbf16>
    %70 = vector.extract_strided_slice %36 {offsets = [0, 0, 8], sizes = [2, 8, 8], strides = [1, 1, 1]} : vector<2x8x32xbf16> to vector<2x8x8xbf16>
    "tpu.trace_start"() <{level = 10 : i32, message = "bqk,bkd->bqd"}> : () -> ()
    %cst_24 = arith.constant dense<0.000000e+00> : vector<2x8x8xf32>
    %71 = tpu.matmul %69, %70, %cst_24 {dimension_numbers = #tpu.dot_dimension_numbers<[2], [1], [1], [2], [0, 0, 0, 1, 1, 2], [0], [0]>} : vector<2x8x8xbf16>, vector<2x8x8xbf16>, vector<2x8x8xf32> -> vector<2x8x8xf32>
    "tpu.trace_stop"() : () -> ()
    %72 = vector.extract_strided_slice %30 {offsets = [0, 0, 16], sizes = [2, 8, 8], strides = [1, 1, 1]} : vector<2x8x32xbf16> to vector<2x8x8xbf16>
    %73 = vector.extract_strided_slice %33 {offsets = [0, 0, 16], sizes = [2, 8, 8], strides = [1, 1, 1]} : vector<2x8x32xbf16> to vector<2x8x8xbf16>
    "tpu.trace_start"() <{level = 10 : i32, message = "bqd,bkd->bqk"}> : () -> ()
    %cst_25 = arith.constant dense<0.000000e+00> : vector<2x8x8xf32>
    %74 = tpu.matmul %72, %73, %cst_25 {dimension_numbers = #tpu.dot_dimension_numbers<[2], [2], [1], [1], [0, 0, 0, 1, 1, 1], [0], [0]>} : vector<2x8x8xbf16>, vector<2x8x8xbf16>, vector<2x8x8xf32> -> vector<2x8x8xf32>
    "tpu.trace_stop"() : () -> ()
    %cst_26 = arith.constant dense<0xFF800000> : vector<2x8xf32>
    %75 = vector.multi_reduction <maximumf>, %74, %cst_26 [2] : vector<2x8x8xf32> to vector<2x8xf32>
    %76 = vector.shape_cast %75 : vector<2x8xf32> to vector<2x8x1xf32>
    %77 = vector.broadcast %76 : vector<2x8x1xf32> to vector<2x8x8xf32>
    %78 = arith.subf %74, %77 : vector<2x8x8xf32>
    %79 = math.exp %78 : vector<2x8x8xf32>
    %cst_27 = arith.constant dense<0.000000e+00> : vector<2x8xf32>
    %80 = vector.multi_reduction <add>, %79, %cst_27 [2] : vector<2x8x8xf32> to vector<2x8xf32>
    %81 = vector.shape_cast %80 : vector<2x8xf32> to vector<2x8x1xf32>
    %cst_28 = arith.constant 1.000000e+00 : f32
    %82 = vector.broadcast %cst_28 : f32 to vector<2x8x1xf32>
    %83 = arith.divf %82, %81 : vector<2x8x1xf32>
    %84 = vector.broadcast %83 : vector<2x8x1xf32> to vector<2x8x8xf32>
    %85 = arith.mulf %79, %84 : vector<2x8x8xf32>
    %86 = arith.truncf %85 : vector<2x8x8xf32> to vector<2x8x8xbf16>
    %87 = vector.extract_strided_slice %36 {offsets = [0, 0, 16], sizes = [2, 8, 8], strides = [1, 1, 1]} : vector<2x8x32xbf16> to vector<2x8x8xbf16>
    "tpu.trace_start"() <{level = 10 : i32, message = "bqk,bkd->bqd"}> : () -> ()
    %cst_29 = arith.constant dense<0.000000e+00> : vector<2x8x8xf32>
    %88 = tpu.matmul %86, %87, %cst_29 {dimension_numbers = #tpu.dot_dimension_numbers<[2], [1], [1], [2], [0, 0, 0, 1, 1, 2], [0], [0]>} : vector<2x8x8xbf16>, vector<2x8x8xbf16>, vector<2x8x8xf32> -> vector<2x8x8xf32>
    "tpu.trace_stop"() : () -> ()
    %89 = vector.extract_strided_slice %30 {offsets = [0, 0, 24], sizes = [2, 8, 8], strides = [1, 1, 1]} : vector<2x8x32xbf16> to vector<2x8x8xbf16>
    %90 = vector.extract_strided_slice %33 {offsets = [0, 0, 24], sizes = [2, 8, 8], strides = [1, 1, 1]} : vector<2x8x32xbf16> to vector<2x8x8xbf16>
    "tpu.trace_start"() <{level = 10 : i32, message = "bqd,bkd->bqk"}> : () -> ()
    %cst_30 = arith.constant dense<0.000000e+00> : vector<2x8x8xf32>
    %91 = tpu.matmul %89, %90, %cst_30 {dimension_numbers = #tpu.dot_dimension_numbers<[2], [2], [1], [1], [0, 0, 0, 1, 1, 1], [0], [0]>} : vector<2x8x8xbf16>, vector<2x8x8xbf16>, vector<2x8x8xf32> -> vector<2x8x8xf32>
    "tpu.trace_stop"() : () -> ()
    %cst_31 = arith.constant dense<0xFF800000> : vector<2x8xf32>
    %92 = vector.multi_reduction <maximumf>, %91, %cst_31 [2] : vector<2x8x8xf32> to vector<2x8xf32>
    %93 = vector.shape_cast %92 : vector<2x8xf32> to vector<2x8x1xf32>
    %94 = vector.broadcast %93 : vector<2x8x1xf32> to vector<2x8x8xf32>
    %95 = arith.subf %91, %94 : vector<2x8x8xf32>
    %96 = math.exp %95 : vector<2x8x8xf32>
    %cst_32 = arith.constant dense<0.000000e+00> : vector<2x8xf32>
    %97 = vector.multi_reduction <add>, %96, %cst_32 [2] : vector<2x8x8xf32> to vector<2x8xf32>
    %98 = vector.shape_cast %97 : vector<2x8xf32> to vector<2x8x1xf32>
    %cst_33 = arith.constant 1.000000e+00 : f32
    %99 = vector.broadcast %cst_33 : f32 to vector<2x8x1xf32>
    %100 = arith.divf %99, %98 : vector<2x8x1xf32>
    %101 = vector.broadcast %100 : vector<2x8x1xf32> to vector<2x8x8xf32>
    %102 = arith.mulf %96, %101 : vector<2x8x8xf32>
    %103 = arith.truncf %102 : vector<2x8x8xf32> to vector<2x8x8xbf16>
    %104 = vector.extract_strided_slice %36 {offsets = [0, 0, 24], sizes = [2, 8, 8], strides = [1, 1, 1]} : vector<2x8x32xbf16> to vector<2x8x8xbf16>
    "tpu.trace_start"() <{level = 10 : i32, message = "bqk,bkd->bqd"}> : () -> ()
    %cst_34 = arith.constant dense<0.000000e+00> : vector<2x8x8xf32>
    %105 = tpu.matmul %103, %104, %cst_34 {dimension_numbers = #tpu.dot_dimension_numbers<[2], [1], [1], [2], [0, 0, 0, 1, 1, 2], [0], [0]>} : vector<2x8x8xbf16>, vector<2x8x8xbf16>, vector<2x8x8xf32> -> vector<2x8x8xf32>
    "tpu.trace_stop"() : () -> ()
    %106 = tpu.concatenate %54, %71, %88, %105 in 2 : vector<2x8x8xf32>, vector<2x8x8xf32>, vector<2x8x8xf32>, vector<2x8x8xf32> -> vector<2x8x32xf32>
    %107 = vector.shape_cast %106 : vector<2x8x32xf32> to vector<16x32xf32>
    %108 = arith.truncf %107 : vector<16x32xf32> to vector<16x32xbf16>
    %c0_35 = arith.constant 0 : index
    %c0_36 = arith.constant 0 : index
    %109 = vector.load %arg3[%c0_35, %c0_36] : memref<32x32xbf16, #tpu.memory_space<vmem>>, vector<32x32xbf16>
    %cst_37 = arith.constant dense<0.000000e+00> : vector<16x32xf32>
    %110 = tpu.matmul %108, %109, %cst_37 {dimension_numbers = #tpu.dot_dimension_numbers<[1], [0], [0], [1], [0, 0, 1, 1], [], []>} : vector<16x32xbf16>, vector<32x32xbf16>, vector<16x32xf32> -> vector<16x32xf32>
    %c0_38 = arith.constant 0 : index
    %c0_39 = arith.constant 0 : index
    %111 = vector.load %arg4[%c0_38, %c0_39] : memref<1x32xf32, #tpu.memory_space<vmem>>, vector<1x32xf32>
    %112 = vector.broadcast %111 : vector<1x32xf32> to vector<16x32xf32>
    %113 = arith.addf %110, %112 : vector<16x32xf32>
    %114 = arith.addf %0, %113 : vector<16x32xf32>
    %cst_40 = arith.constant dense<0.000000e+00> : vector<16xf32>
    %115 = vector.multi_reduction <add>, %114, %cst_40 [1] : vector<16x32xf32> to vector<16xf32>
    %116 = vector.shape_cast %115 : vector<16xf32> to vector<16x1xf32>
    %cst_41 = arith.constant 3.200000e+01 : f32
    %117 = vector.broadcast %cst_41 : f32 to vector<16x1xf32>
    %118 = arith.divf %116, %117 : vector<16x1xf32>
    %119 = vector.broadcast %118 : vector<16x1xf32> to vector<16x32xf32>
    %120 = arith.subf %114, %119 : vector<16x32xf32>
    %121 = arith.mulf %120, %120 : vector<16x32xf32>
    %cst_42 = arith.constant dense<0.000000e+00> : vector<16xf32>
    %122 = vector.multi_reduction <add>, %121, %cst_42 [1] : vector<16x32xf32> to vector<16xf32>
    %123 = vector.shape_cast %122 : vector<16xf32> to vector<16x1xf32>
    %cst_43 = arith.constant 3.200000e+01 : f32
    %124 = vector.broadcast %cst_43 : f32 to vector<16x1xf32>
    %125 = arith.divf %123, %124 : vector<16x1xf32>
    %126 = vector.broadcast %118 : vector<16x1xf32> to vector<16x32xf32>
    %127 = arith.subf %114, %126 : vector<16x32xf32>
    %cst_44 = arith.constant 9.99999974E-6 : f32
    %128 = vector.broadcast %cst_44 : f32 to vector<16x1xf32>
    %129 = arith.addf %125, %128 : vector<16x1xf32>
    %130 = math.rsqrt %129 : vector<16x1xf32>
    %131 = vector.broadcast %130 : vector<16x1xf32> to vector<16x32xf32>
    %132 = arith.mulf %127, %131 : vector<16x32xf32>
    %c0_45 = arith.constant 0 : index
    %c0_46 = arith.constant 0 : index
    %133 = vector.load %arg11[%c0_45, %c0_46] : memref<1x32xf32, #tpu.memory_space<vmem>>, vector<1x32xf32>
    %134 = vector.broadcast %133 : vector<1x32xf32> to vector<16x32xf32>
    %135 = arith.mulf %132, %134 : vector<16x32xf32>
    %c0_47 = arith.constant 0 : index
    %c0_48 = arith.constant 0 : index
    %136 = vector.load %arg12[%c0_47, %c0_48] : memref<1x32xf32, #tpu.memory_space<vmem>>, vector<1x32xf32>
    %137 = vector.broadcast %136 : vector<1x32xf32> to vector<16x32xf32>
    %138 = arith.addf %135, %137 : vector<16x32xf32>
    %139 = arith.truncf %138 : vector<16x32xf32> to vector<16x32xbf16>
    %c0_49 = arith.constant 0 : index
    %c0_50 = arith.constant 0 : index
    %140 = vector.load %arg5[%c0_49, %c0_50] : memref<32x128xbf16, #tpu.memory_space<vmem>>, vector<32x128xbf16>
    %cst_51 = arith.constant dense<0.000000e+00> : vector<16x128xf32>
    %141 = tpu.matmul %139, %140, %cst_51 {dimension_numbers = #tpu.dot_dimension_numbers<[1], [0], [0], [1], [0, 0, 1, 1], [], []>} : vector<16x32xbf16>, vector<32x128xbf16>, vector<16x128xf32> -> vector<16x128xf32>
    %c0_52 = arith.constant 0 : index
    %c0_53 = arith.constant 0 : index
    %142 = vector.load %arg6[%c0_52, %c0_53] : memref<1x128xf32, #tpu.memory_space<vmem>>, vector<1x128xf32>
    %143 = vector.broadcast %142 : vector<1x128xf32> to vector<16x128xf32>
    %144 = arith.addf %141, %143 : vector<16x128xf32>
    %cst_54 = arith.constant 0.000000e+00 : f32
    %145 = vector.broadcast %cst_54 : f32 to vector<16x128xf32>
    %146 = arith.maximumf %144, %145 : vector<16x128xf32>
    %147 = arith.truncf %146 : vector<16x128xf32> to vector<16x128xbf16>
    %c0_55 = arith.constant 0 : index
    %c0_56 = arith.constant 0 : index
    %148 = vector.load %arg7[%c0_55, %c0_56] : memref<128x32xbf16, #tpu.memory_space<vmem>>, vector<128x32xbf16>
    %cst_57 = arith.constant dense<0.000000e+00> : vector<16x32xf32>
    %149 = tpu.matmul %147, %148, %cst_57 {dimension_numbers = #tpu.dot_dimension_numbers<[1], [0], [0], [1], [0, 0, 1, 1], [], []>} : vector<16x128xbf16>, vector<128x32xbf16>, vector<16x32xf32> -> vector<16x32xf32>
    %c0_58 = arith.constant 0 : index
    %c0_59 = arith.constant 0 : index
    %150 = vector.load %arg8[%c0_58, %c0_59] : memref<1x32xf32, #tpu.memory_space<vmem>>, vector<1x32xf32>
    %151 = vector.broadcast %150 : vector<1x32xf32> to vector<16x32xf32>
    %152 = arith.addf %149, %151 : vector<16x32xf32>
    %153 = arith.addf %114, %152 : vector<16x32xf32>
    %154 = vector.shape_cast %153 : vector<16x32xf32> to vector<2x8x32xf32>
    %cst_60 = arith.constant dense<0.000000e+00> : vector<2x32xf32>
    %155 = vector.multi_reduction <add>, %154, %cst_60 [1] : vector<2x8x32xf32> to vector<2x32xf32>
    %156 = vector.shape_cast %155 : vector<2x32xf32> to vector<2x1x32xf32>
    %cst_61 = arith.constant 8.000000e+00 : f32
    %157 = vector.broadcast %cst_61 : f32 to vector<2x1x32xf32>
    %158 = arith.divf %156, %157 : vector<2x1x32xf32>
    %c0_62 = arith.constant 0 : index
    %c0_63 = arith.constant 0 : index
    %c0_64 = arith.constant 0 : index
    %159 = vector.load %arg13[%c0_62, %c0_63, %c0_64] : memref<2x1x32xf32, #tpu.memory_space<vmem>>, vector<2x1x32xf32>
    tpu.vector_store %arg13[%c0_62, %c0_63, %c0_64], %158 {strides = array<i32>} : memref<2x1x32xf32, #tpu.memory_space<vmem>>, vector<2x1x32xf32>,
    return
  }
  func.func @transform_0(%arg0: i32) -> (i32, i32) {
    %c0_i32 = arith.constant 0 : i32
    %c0_i32_0 = arith.constant 0 : i32
    return %arg0, %c0_i32 : i32, i32
  }
  func.func @transform_1(%arg0: i32) -> (i32, i32) {
    %c0_i32 = arith.constant 0 : i32
    %c0_i32_0 = arith.constant 0 : i32
    %c0_i32_1 = arith.constant 0 : i32
    return %c0_i32, %c0_i32_0 : i32, i32
  }
  func.func @transform_2(%arg0: i32) -> (i32, i32) {
    %c0_i32 = arith.constant 0 : i32
    %c0_i32_0 = arith.constant 0 : i32
    %c0_i32_1 = arith.constant 0 : i32
    return %c0_i32, %c0_i32_0 : i32, i32
  }
  func.func @transform_3(%arg0: i32) -> (i32, i32) {
    %c0_i32 = arith.constant 0 : i32
    %c0_i32_0 = arith.constant 0 : i32
    %c0_i32_1 = arith.constant 0 : i32
    return %c0_i32, %c0_i32_0 : i32, i32
  }
  func.func @transform_4(%arg0: i32) -> (i32, i32) {
    %c0_i32 = arith.constant 0 : i32
    %c0_i32_0 = arith.constant 0 : i32
    %c0_i32_1 = arith.constant 0 : i32
    return %c0_i32, %c0_i32_0 : i32, i32
  }
  func.func @transform_5(%arg0: i32) -> (i32, i32) {
    %c0_i32 = arith.constant 0 : i32
    %c0_i32_0 = arith.constant 0 : i32
    %c0_i32_1 = arith.constant 0 : i32
    return %c0_i32, %c0_i32_0 : i32, i32
  }
  func.func @transform_6(%arg0: i32) -> (i32, i32) {
    %c0_i32 = arith.constant 0 : i32
    %c0_i32_0 = arith.constant 0 : i32
    %c0_i32_1 = arith.constant 0 : i32
    return %c0_i32, %c0_i32_0 : i32, i32
  }
  func.func @transform_7(%arg0: i32) -> (i32, i32) {
    %c0_i32 = arith.constant 0 : i32
    %c0_i32_0 = arith.constant 0 : i32
    %c0_i32_1 = arith.constant 0 : i32
    return %c0_i32, %c0_i32_0 : i32, i32
  }
  func.func @transform_8(%arg0: i32) -> (i32, i32) {
    %c0_i32 = arith.constant 0 : i32
    %c0_i32_0 = arith.constant 0 : i32
    %c0_i32_1 = arith.constant 0 : i32
    return %c0_i32, %c0_i32_0 : i32, i32
  }
  func.func @transform_9(%arg0: i32) -> (i32, i32) {
    %c0_i32 = arith.constant 0 : i32
    %c0_i32_0 = arith.constant 0 : i32
    %c0_i32_1 = arith.constant 0 : i32
    return %c0_i32, %c0_i32_0 : i32, i32
  }
  func.func @transform_10(%arg0: i32) -> (i32, i32) {
    %c0_i32 = arith.constant 0 : i32
    %c0_i32_0 = arith.constant 0 : i32
    %c0_i32_1 = arith.constant 0 : i32
    return %c0_i32, %c0_i32_0 : i32, i32
  }
  func.func @transform_11(%arg0: i32) -> (i32, i32) {
    %c0_i32 = arith.constant 0 : i32
    %c0_i32_0 = arith.constant 0 : i32
    %c0_i32_1 = arith.constant 0 : i32
    return %c0_i32, %c0_i32_0 : i32, i32
  }
  func.func @transform_12(%arg0: i32) -> (i32, i32, i32) {
    %c0_i32 = arith.constant 0 : i32
    %c0_i32_0 = arith.constant 0 : i32
    %c0_i32_1 = arith.constant 0 : i32
    return %arg0, %c0_i32, %c0_i32_0 : i32, i32, i32
  }
  func.func @transform_13(%arg0: i32) -> (i32, i32, i32) {
    %c0_i32 = arith.constant 0 : i32
    %c0_i32_0 = arith.constant 0 : i32
    %c0_i32_1 = arith.constant 0 : i32
    return %arg0, %c0_i32, %c0_i32_0 : i32, i32, i32
  }
}

module attributes {stable_mosaic.version = 11 : i64} {
  func.func @encoder_layer_kernel(%arg0: i32, %arg1: memref<16x32xf32, #tpu.memory_space<vmem>>, %arg2: memref<32x96xbf16, #tpu.memory_space<vmem>>, %arg3: memref<32x32xbf16, #tpu.memory_space<vmem>>, %arg4: memref<1x32xf32, #tpu.memory_space<vmem>>, %arg5: memref<32x128xbf16, #tpu.memory_space<vmem>>, %arg6: memref<1x128xf32, #tpu.memory_space<vmem>>, %arg7: memref<128x32xbf16, #tpu.memory_space<vmem>>, %arg8: memref<1x32xf32, #tpu.memory_space<vmem>>, %arg9: memref<1x32xf32, #tpu.memory_space<vmem>>, %arg10: memref<1x32xf32, #tpu.memory_space<vmem>>, %arg11: memref<1x32xf32, #tpu.memory_space<vmem>>, %arg12: memref<1x32xf32, #tpu.memory_space<vmem>>, %arg13: memref<16x32xf32, #tpu.memory_space<vmem>>, %arg14: memref<2x8x8xf32, #tpu.memory_space<vmem>>) attributes {dimension_semantics = [#tpu.dimension_semantics<parallel>], iteration_bounds = array<i64: 1>, scalar_prefetch = 0 : i64, scratch_operands = 0 : i64, tpu.core_type = #tpu.core_type<tc>, window_params = [{transform_indices = @transform_0, window_bounds = array<i64: 16, 32>}, {pipeline_mode = #tpu.pipeline_mode<synchronous>, transform_indices = @transform_1, window_bounds = array<i64: 32, 96>}, {pipeline_mode = #tpu.pipeline_mode<synchronous>, transform_indices = @transform_2, window_bounds = array<i64: 32, 32>}, {pipeline_mode = #tpu.pipeline_mode<synchronous>, transform_indices = @transform_3, window_bounds = array<i64: 1, 32>}, {pipeline_mode = #tpu.pipeline_mode<synchronous>, transform_indices = @transform_4, window_bounds = array<i64: 32, 128>}, {pipeline_mode = #tpu.pipeline_mode<synchronous>, transform_indices = @transform_5, window_bounds = array<i64: 1, 128>}, {pipeline_mode = #tpu.pipeline_mode<synchronous>, transform_indices = @transform_6, window_bounds = array<i64: 128, 32>}, {pipeline_mode = #tpu.pipeline_mode<synchronous>, transform_indices = @transform_7, window_bounds = array<i64: 1, 32>}, {pipeline_mode = #tpu.pipeline_mode<synchronous>, transform_indices = @transform_8, window_bounds = array<i64: 1, 32>}, {pipeline_mode = #tpu.pipeline_mode<synchronous>, transform_indices = @transform_9, window_bounds = array<i64: 1, 32>}, {pipeline_mode = #tpu.pipeline_mode<synchronous>, transform_indices = @transform_10, window_bounds = array<i64: 1, 32>}, {pipeline_mode = #tpu.pipeline_mode<synchronous>, transform_indices = @transform_11, window_bounds = array<i64: 1, 32>}, {transform_indices = @transform_12, window_bounds = array<i64: 16, 32>}, {transform_indices = @transform_13, window_bounds = array<i64: 2, 8, 8>}]} {
    %c0 = arith.constant 0 : index
    %c0_0 = arith.constant 0 : index
    %0 = vector.load %arg1[%c0, %c0_0] : memref<16x32xf32, #tpu.memory_space<vmem>>, vector<16x32xf32>
    %cst = arith.constant dense<0.000000e+00> : vector<16xf32>
    %1 = vector.multi_reduction <add>, %0, %cst [1] : vector<16x32xf32> to vector<16xf32>
    %2 = vector.shape_cast %1 : vector<16xf32> to vector<16x1xf32>
    %cst_1 = arith.constant 3.200000e+01 : f32
    %3 = vector.broadcast %cst_1 : f32 to vector<16x1xf32>
    %4 = arith.divf %2, %3 : vector<16x1xf32>
    %5 = vector.broadcast %4 : vector<16x1xf32> to vector<16x32xf32>
    %6 = arith.subf %0, %5 : vector<16x32xf32>
    %7 = arith.mulf %6, %6 : vector<16x32xf32>
    %cst_2 = arith.constant dense<0.000000e+00> : vector<16xf32>
    %8 = vector.multi_reduction <add>, %7, %cst_2 [1] : vector<16x32xf32> to vector<16xf32>
    %9 = vector.shape_cast %8 : vector<16xf32> to vector<16x1xf32>
    %cst_3 = arith.constant 3.200000e+01 : f32
    %10 = vector.broadcast %cst_3 : f32 to vector<16x1xf32>
    %11 = arith.divf %9, %10 : vector<16x1xf32>
    %12 = vector.broadcast %4 : vector<16x1xf32> to vector<16x32xf32>
    %13 = arith.subf %0, %12 : vector<16x32xf32>
    %cst_4 = arith.constant 9.99999974E-6 : f32
    %14 = vector.broadcast %cst_4 : f32 to vector<16x1xf32>
    %15 = arith.addf %11, %14 : vector<16x1xf32>
    %16 = math.rsqrt %15 : vector<16x1xf32>
    %17 = vector.broadcast %16 : vector<16x1xf32> to vector<16x32xf32>
    %18 = arith.mulf %13, %17 : vector<16x32xf32>
    %c0_5 = arith.constant 0 : index
    %c0_6 = arith.constant 0 : index
    %19 = vector.load %arg9[%c0_5, %c0_6] : memref<1x32xf32, #tpu.memory_space<vmem>>, vector<1x32xf32>
    %20 = vector.broadcast %19 : vector<1x32xf32> to vector<16x32xf32>
    %21 = arith.mulf %18, %20 : vector<16x32xf32>
    %c0_7 = arith.constant 0 : index
    %c0_8 = arith.constant 0 : index
    %22 = vector.load %arg10[%c0_7, %c0_8] : memref<1x32xf32, #tpu.memory_space<vmem>>, vector<1x32xf32>
    %23 = vector.broadcast %22 : vector<1x32xf32> to vector<16x32xf32>
    %24 = arith.addf %21, %23 : vector<16x32xf32>
    %25 = arith.truncf %24 : vector<16x32xf32> to vector<16x32xbf16>
    %c0_9 = arith.constant 0 : index
    %c0_10 = arith.constant 0 : index
    %26 = vector.load %arg2[%c0_9, %c0_10] : memref<32x96xbf16, #tpu.memory_space<vmem>>, vector<32x96xbf16>
    %cst_11 = arith.constant dense<0.000000e+00> : vector<16x96xf32>
    %27 = tpu.matmul %25, %26, %cst_11 {dimension_numbers = #tpu.dot_dimension_numbers<[1], [0], [0], [1], [0, 0, 1, 1], [], []>} : vector<16x32xbf16>, vector<32x96xbf16>, vector<16x96xf32> -> vector<16x96xf32>
    %28 = vector.extract_strided_slice %27 {offsets = [0, 0], sizes = [16, 32], strides = [1, 1]} : vector<16x96xf32> to vector<16x32xf32>
    %29 = vector.shape_cast %28 : vector<16x32xf32> to vector<2x8x32xf32>
    %30 = arith.truncf %29 : vector<2x8x32xf32> to vector<2x8x32xbf16>
    %31 = vector.extract_strided_slice %27 {offsets = [0, 32], sizes = [16, 32], strides = [1, 1]} : vector<16x96xf32> to vector<16x32xf32>
    %32 = vector.shape_cast %31 : vector<16x32xf32> to vector<2x8x32xf32>
    %33 = arith.truncf %32 : vector<2x8x32xf32> to vector<2x8x32xbf16>
    %34 = vector.extract_strided_slice %27 {offsets = [0, 64], sizes = [16, 32], strides = [1, 1]} : vector<16x96xf32> to vector<16x32xf32>
    %35 = vector.shape_cast %34 : vector<16x32xf32> to vector<2x8x32xf32>
    %36 = arith.truncf %35 : vector<2x8x32xf32> to vector<2x8x32xbf16>
    %37 = vector.extract_strided_slice %30 {offsets = [0, 0, 0], sizes = [2, 8, 8], strides = [1, 1, 1]} : vector<2x8x32xbf16> to vector<2x8x8xbf16>
    %38 = vector.extract_strided_slice %33 {offsets = [0, 0, 0], sizes = [2, 8, 8], strides = [1, 1, 1]} : vector<2x8x32xbf16> to vector<2x8x8xbf16>
    "tpu.trace_start"() <{level = 10 : i32, message = "bqd,bkd->bqk"}> : () -> ()
    %cst_12 = arith.constant dense<0.000000e+00> : vector<2x8x8xf32>
    %39 = tpu.matmul %37, %38, %cst_12 {dimension_numbers = #tpu.dot_dimension_numbers<[2], [2], [1], [1], [0, 0, 0, 1, 1, 1], [0], [0]>} : vector<2x8x8xbf16>, vector<2x8x8xbf16>, vector<2x8x8xf32> -> vector<2x8x8xf32>
    "tpu.trace_stop"() : () -> ()
    %cst_13 = arith.constant dense<0xFF800000> : vector<2x8xf32>
    %40 = vector.multi_reduction <maximumf>, %39, %cst_13 [2] : vector<2x8x8xf32> to vector<2x8xf32>
    %41 = vector.shape_cast %40 : vector<2x8xf32> to vector<2x8x1xf32>
    %42 = vector.broadcast %41 : vector<2x8x1xf32> to vector<2x8x8xf32>
    %43 = arith.subf %39, %42 : vector<2x8x8xf32>
    %44 = math.exp %43 : vector<2x8x8xf32>
    %cst_14 = arith.constant dense<0.000000e+00> : vector<2x8xf32>
    %45 = vector.multi_reduction <add>, %44, %cst_14 [2] : vector<2x8x8xf32> to vector<2x8xf32>
    %46 = vector.shape_cast %45 : vector<2x8xf32> to vector<2x8x1xf32>
    %cst_15 = arith.constant 1.000000e+00 : f32
    %47 = vector.broadcast %cst_15 : f32 to vector<2x8x1xf32>
    %48 = arith.divf %47, %46 : vector<2x8x1xf32>
    %49 = vector.broadcast %48 : vector<2x8x1xf32> to vector<2x8x8xf32>
    %50 = arith.mulf %44, %49 : vector<2x8x8xf32>
    %c0_16 = arith.constant 0 : index
    %c0_17 = arith.constant 0 : index
    %c0_18 = arith.constant 0 : index
    %51 = vector.load %arg14[%c0_16, %c0_17, %c0_18] : memref<2x8x8xf32, #tpu.memory_space<vmem>>, vector<2x8x8xf32>
    tpu.vector_store %arg14[%c0_16, %c0_17, %c0_18], %50 {strides = array<i32>} : memref<2x8x8xf32, #tpu.memory_space<vmem>>, vector<2x8x8xf32>,
    %52 = arith.truncf %50 : vector<2x8x8xf32> to vector<2x8x8xbf16>
    %53 = vector.extract_strided_slice %36 {offsets = [0, 0, 0], sizes = [2, 8, 8], strides = [1, 1, 1]} : vector<2x8x32xbf16> to vector<2x8x8xbf16>
    "tpu.trace_start"() <{level = 10 : i32, message = "bqk,bkd->bqd"}> : () -> ()
    %cst_19 = arith.constant dense<0.000000e+00> : vector<2x8x8xf32>
    %54 = tpu.matmul %52, %53, %cst_19 {dimension_numbers = #tpu.dot_dimension_numbers<[2], [1], [1], [2], [0, 0, 0, 1, 1, 2], [0], [0]>} : vector<2x8x8xbf16>, vector<2x8x8xbf16>, vector<2x8x8xf32> -> vector<2x8x8xf32>
    "tpu.trace_stop"() : () -> ()
    %55 = vector.extract_strided_slice %30 {offsets = [0, 0, 8], sizes = [2, 8, 8], strides = [1, 1, 1]} : vector<2x8x32xbf16> to vector<2x8x8xbf16>
    %56 = vector.extract_strided_slice %33 {offsets = [0, 0, 8], sizes = [2, 8, 8], strides = [1, 1, 1]} : vector<2x8x32xbf16> to vector<2x8x8xbf16>
    "tpu.trace_start"() <{level = 10 : i32, message = "bqd,bkd->bqk"}> : () -> ()
    %cst_20 = arith.constant dense<0.000000e+00> : vector<2x8x8xf32>
    %57 = tpu.matmul %55, %56, %cst_20 {dimension_numbers = #tpu.dot_dimension_numbers<[2], [2], [1], [1], [0, 0, 0, 1, 1, 1], [0], [0]>} : vector<2x8x8xbf16>, vector<2x8x8xbf16>, vector<2x8x8xf32> -> vector<2x8x8xf32>
    "tpu.trace_stop"() : () -> ()
    %cst_21 = arith.constant dense<0xFF800000> : vector<2x8xf32>
    %58 = vector.multi_reduction <maximumf>, %57, %cst_21 [2] : vector<2x8x8xf32> to vector<2x8xf32>
    %59 = vector.shape_cast %58 : vector<2x8xf32> to vector<2x8x1xf32>
    %60 = vector.broadcast %59 : vector<2x8x1xf32> to vector<2x8x8xf32>
    %61 = arith.subf %57, %60 : vector<2x8x8xf32>
    %62 = math.exp %61 : vector<2x8x8xf32>
    %cst_22 = arith.constant dense<0.000000e+00> : vector<2x8xf32>
    %63 = vector.multi_reduction <add>, %62, %cst_22 [2] : vector<2x8x8xf32> to vector<2x8xf32>
    %64 = vector.shape_cast %63 : vector<2x8xf32> to vector<2x8x1xf32>
    %cst_23 = arith.constant 1.000000e+00 : f32
    %65 = vector.broadcast %cst_23 : f32 to vector<2x8x1xf32>
    %66 = arith.divf %65, %64 : vector<2x8x1xf32>
    %67 = vector.broadcast %66 : vector<2x8x1xf32> to vector<2x8x8xf32>
    %68 = arith.mulf %62, %67 : vector<2x8x8xf32>
    %69 = arith.truncf %68 : vector<2x8x8xf32> to vector<2x8x8xbf16>
    %70 = vector.extract_strided_slice %36 {offsets = [0, 0, 8], sizes = [2, 8, 8], strides = [1, 1, 1]} : vector<2x8x32xbf16> to vector<2x8x8xbf16>
    "tpu.trace_start"() <{level = 10 : i32, message = "bqk,bkd->bqd"}> : () -> ()
    %cst_24 = arith.constant dense<0.000000e+00> : vector<2x8x8xf32>
    %71 = tpu.matmul %69, %70, %cst_24 {dimension_numbers = #tpu.dot_dimension_numbers<[2], [1], [1], [2], [0, 0, 0, 1, 1, 2], [0], [0]>} : vector<2x8x8xbf16>, vector<2x8x8xbf16>, vector<2x8x8xf32> -> vector<2x8x8xf32>
    "tpu.trace_stop"() : () -> ()
    %72 = vector.extract_strided_slice %30 {offsets = [0, 0, 16], sizes = [2, 8, 8], strides = [1, 1, 1]} : vector<2x8x32xbf16> to vector<2x8x8xbf16>
    %73 = vector.extract_strided_slice %33 {offsets = [0, 0, 16], sizes = [2, 8, 8], strides = [1, 1, 1]} : vector<2x8x32xbf16> to vector<2x8x8xbf16>
    "tpu.trace_start"() <{level = 10 : i32, message = "bqd,bkd->bqk"}> : () -> ()
    %cst_25 = arith.constant dense<0.000000e+00> : vector<2x8x8xf32>
    %74 = tpu.matmul %72, %73, %cst_25 {dimension_numbers = #tpu.dot_dimension_numbers<[2], [2], [1], [1], [0, 0, 0, 1, 1, 1], [0], [0]>} : vector<2x8x8xbf16>, vector<2x8x8xbf16>, vector<2x8x8xf32> -> vector<2x8x8xf32>
    "tpu.trace_stop"() : () -> ()
    %cst_26 = arith.constant dense<0xFF800000> : vector<2x8xf32>
    %75 = vector.multi_reduction <maximumf>, %74, %cst_26 [2] : vector<2x8x8xf32> to vector<2x8xf32>
    %76 = vector.shape_cast %75 : vector<2x8xf32> to vector<2x8x1xf32>
    %77 = vector.broadcast %76 : vector<2x8x1xf32> to vector<2x8x8xf32>
    %78 = arith.subf %74, %77 : vector<2x8x8xf32>
    %79 = math.exp %78 : vector<2x8x8xf32>
    %cst_27 = arith.constant dense<0.000000e+00> : vector<2x8xf32>
    %80 = vector.multi_reduction <add>, %79, %cst_27 [2] : vector<2x8x8xf32> to vector<2x8xf32>
    %81 = vector.shape_cast %80 : vector<2x8xf32> to vector<2x8x1xf32>
    %cst_28 = arith.constant 1.000000e+00 : f32
    %82 = vector.broadcast %cst_28 : f32 to vector<2x8x1xf32>
    %83 = arith.divf %82, %81 : vector<2x8x1xf32>
    %84 = vector.broadcast %83 : vector<2x8x1xf32> to vector<2x8x8xf32>
    %85 = arith.mulf %79, %84 : vector<2x8x8xf32>
    %86 = arith.truncf %85 : vector<2x8x8xf32> to vector<2x8x8xbf16>
    %87 = vector.extract_strided_slice %36 {offsets = [0, 0, 16], sizes = [2, 8, 8], strides = [1, 1, 1]} : vector<2x8x32xbf16> to vector<2x8x8xbf16>
    "tpu.trace_start"() <{level = 10 : i32, message = "bqk,bkd->bqd"}> : () -> ()
    %cst_29 = arith.constant dense<0.000000e+00> : vector<2x8x8xf32>
    %88 = tpu.matmul %86, %87, %cst_29 {dimension_numbers = #tpu.dot_dimension_numbers<[2], [1], [1], [2], [0, 0, 0, 1, 1, 2], [0], [0]>} : vector<2x8x8xbf16>, vector<2x8x8xbf16>, vector<2x8x8xf32> -> vector<2x8x8xf32>
    "tpu.trace_stop"() : () -> ()
    %89 = vector.extract_strided_slice %30 {offsets = [0, 0, 24], sizes = [2, 8, 8], strides = [1, 1, 1]} : vector<2x8x32xbf16> to vector<2x8x8xbf16>
    %90 = vector.extract_strided_slice %33 {offsets = [0, 0, 24], sizes = [2, 8, 8], strides = [1, 1, 1]} : vector<2x8x32xbf16> to vector<2x8x8xbf16>
    "tpu.trace_start"() <{level = 10 : i32, message = "bqd,bkd->bqk"}> : () -> ()
    %cst_30 = arith.constant dense<0.000000e+00> : vector<2x8x8xf32>
    %91 = tpu.matmul %89, %90, %cst_30 {dimension_numbers = #tpu.dot_dimension_numbers<[2], [2], [1], [1], [0, 0, 0, 1, 1, 1], [0], [0]>} : vector<2x8x8xbf16>, vector<2x8x8xbf16>, vector<2x8x8xf32> -> vector<2x8x8xf32>
    "tpu.trace_stop"() : () -> ()
    %cst_31 = arith.constant dense<0xFF800000> : vector<2x8xf32>
    %92 = vector.multi_reduction <maximumf>, %91, %cst_31 [2] : vector<2x8x8xf32> to vector<2x8xf32>
    %93 = vector.shape_cast %92 : vector<2x8xf32> to vector<2x8x1xf32>
    %94 = vector.broadcast %93 : vector<2x8x1xf32> to vector<2x8x8xf32>
    %95 = arith.subf %91, %94 : vector<2x8x8xf32>
    %96 = math.exp %95 : vector<2x8x8xf32>
    %cst_32 = arith.constant dense<0.000000e+00> : vector<2x8xf32>
    %97 = vector.multi_reduction <add>, %96, %cst_32 [2] : vector<2x8x8xf32> to vector<2x8xf32>
    %98 = vector.shape_cast %97 : vector<2x8xf32> to vector<2x8x1xf32>
    %cst_33 = arith.constant 1.000000e+00 : f32
    %99 = vector.broadcast %cst_33 : f32 to vector<2x8x1xf32>
    %100 = arith.divf %99, %98 : vector<2x8x1xf32>
    %101 = vector.broadcast %100 : vector<2x8x1xf32> to vector<2x8x8xf32>
    %102 = arith.mulf %96, %101 : vector<2x8x8xf32>
    %103 = arith.truncf %102 : vector<2x8x8xf32> to vector<2x8x8xbf16>
    %104 = vector.extract_strided_slice %36 {offsets = [0, 0, 24], sizes = [2, 8, 8], strides = [1, 1, 1]} : vector<2x8x32xbf16> to vector<2x8x8xbf16>
    "tpu.trace_start"() <{level = 10 : i32, message = "bqk,bkd->bqd"}> : () -> ()
    %cst_34 = arith.constant dense<0.000000e+00> : vector<2x8x8xf32>
    %105 = tpu.matmul %103, %104, %cst_34 {dimension_numbers = #tpu.dot_dimension_numbers<[2], [1], [1], [2], [0, 0, 0, 1, 1, 2], [0], [0]>} : vector<2x8x8xbf16>, vector<2x8x8xbf16>, vector<2x8x8xf32> -> vector<2x8x8xf32>
    "tpu.trace_stop"() : () -> ()
    %106 = tpu.concatenate %54, %71, %88, %105 in 2 : vector<2x8x8xf32>, vector<2x8x8xf32>, vector<2x8x8xf32>, vector<2x8x8xf32> -> vector<2x8x32xf32>
    %107 = vector.shape_cast %106 : vector<2x8x32xf32> to vector<16x32xf32>
    %108 = arith.truncf %107 : vector<16x32xf32> to vector<16x32xbf16>
    %c0_35 = arith.constant 0 : index
    %c0_36 = arith.constant 0 : index
    %109 = vector.load %arg3[%c0_35, %c0_36] : memref<32x32xbf16, #tpu.memory_space<vmem>>, vector<32x32xbf16>
    %cst_37 = arith.constant dense<0.000000e+00> : vector<16x32xf32>
    %110 = tpu.matmul %108, %109, %cst_37 {dimension_numbers = #tpu.dot_dimension_numbers<[1], [0], [0], [1], [0, 0, 1, 1], [], []>} : vector<16x32xbf16>, vector<32x32xbf16>, vector<16x32xf32> -> vector<16x32xf32>
    %c0_38 = arith.constant 0 : index
    %c0_39 = arith.constant 0 : index
    %111 = vector.load %arg4[%c0_38, %c0_39] : memref<1x32xf32, #tpu.memory_space<vmem>>, vector<1x32xf32>
    %112 = vector.broadcast %111 : vector<1x32xf32> to vector<16x32xf32>
    %113 = arith.addf %110, %112 : vector<16x32xf32>
    %114 = arith.addf %0, %113 : vector<16x32xf32>
    %cst_40 = arith.constant dense<0.000000e+00> : vector<16xf32>
    %115 = vector.multi_reduction <add>, %114, %cst_40 [1] : vector<16x32xf32> to vector<16xf32>
    %116 = vector.shape_cast %115 : vector<16xf32> to vector<16x1xf32>
    %cst_41 = arith.constant 3.200000e+01 : f32
    %117 = vector.broadcast %cst_41 : f32 to vector<16x1xf32>
    %118 = arith.divf %116, %117 : vector<16x1xf32>
    %119 = vector.broadcast %118 : vector<16x1xf32> to vector<16x32xf32>
    %120 = arith.subf %114, %119 : vector<16x32xf32>
    %121 = arith.mulf %120, %120 : vector<16x32xf32>
    %cst_42 = arith.constant dense<0.000000e+00> : vector<16xf32>
    %122 = vector.multi_reduction <add>, %121, %cst_42 [1] : vector<16x32xf32> to vector<16xf32>
    %123 = vector.shape_cast %122 : vector<16xf32> to vector<16x1xf32>
    %cst_43 = arith.constant 3.200000e+01 : f32
    %124 = vector.broadcast %cst_43 : f32 to vector<16x1xf32>
    %125 = arith.divf %123, %124 : vector<16x1xf32>
    %126 = vector.broadcast %118 : vector<16x1xf32> to vector<16x32xf32>
    %127 = arith.subf %114, %126 : vector<16x32xf32>
    %cst_44 = arith.constant 9.99999974E-6 : f32
    %128 = vector.broadcast %cst_44 : f32 to vector<16x1xf32>
    %129 = arith.addf %125, %128 : vector<16x1xf32>
    %130 = math.rsqrt %129 : vector<16x1xf32>
    %131 = vector.broadcast %130 : vector<16x1xf32> to vector<16x32xf32>
    %132 = arith.mulf %127, %131 : vector<16x32xf32>
    %c0_45 = arith.constant 0 : index
    %c0_46 = arith.constant 0 : index
    %133 = vector.load %arg11[%c0_45, %c0_46] : memref<1x32xf32, #tpu.memory_space<vmem>>, vector<1x32xf32>
    %134 = vector.broadcast %133 : vector<1x32xf32> to vector<16x32xf32>
    %135 = arith.mulf %132, %134 : vector<16x32xf32>
    %c0_47 = arith.constant 0 : index
    %c0_48 = arith.constant 0 : index
    %136 = vector.load %arg12[%c0_47, %c0_48] : memref<1x32xf32, #tpu.memory_space<vmem>>, vector<1x32xf32>
    %137 = vector.broadcast %136 : vector<1x32xf32> to vector<16x32xf32>
    %138 = arith.addf %135, %137 : vector<16x32xf32>
    %139 = arith.truncf %138 : vector<16x32xf32> to vector<16x32xbf16>
    %c0_49 = arith.constant 0 : index
    %c0_50 = arith.constant 0 : index
    %140 = vector.load %arg5[%c0_49, %c0_50] : memref<32x128xbf16, #tpu.memory_space<vmem>>, vector<32x128xbf16>
    %cst_51 = arith.constant dense<0.000000e+00> : vector<16x128xf32>
    %141 = tpu.matmul %139, %140, %cst_51 {dimension_numbers = #tpu.dot_dimension_numbers<[1], [0], [0], [1], [0, 0, 1, 1], [], []>} : vector<16x32xbf16>, vector<32x128xbf16>, vector<16x128xf32> -> vector<16x128xf32>
    %c0_52 = arith.constant 0 : index
    %c0_53 = arith.constant 0 : index
    %142 = vector.load %arg6[%c0_52, %c0_53] : memref<1x128xf32, #tpu.memory_space<vmem>>, vector<1x128xf32>
    %143 = vector.broadcast %142 : vector<1x128xf32> to vector<16x128xf32>
    %144 = arith.addf %141, %143 : vector<16x128xf32>
    %cst_54 = arith.constant 0.000000e+00 : f32
    %145 = vector.broadcast %cst_54 : f32 to vector<16x128xf32>
    %146 = arith.maximumf %144, %145 : vector<16x128xf32>
    %147 = arith.truncf %146 : vector<16x128xf32> to vector<16x128xbf16>
    %c0_55 = arith.constant 0 : index
    %c0_56 = arith.constant 0 : index
    %148 = vector.load %arg7[%c0_55, %c0_56] : memref<128x32xbf16, #tpu.memory_space<vmem>>, vector<128x32xbf16>
    %cst_57 = arith.constant dense<0.000000e+00> : vector<16x32xf32>
    %149 = tpu.matmul %147, %148, %cst_57 {dimension_numbers = #tpu.dot_dimension_numbers<[1], [0], [0], [1], [0, 0, 1, 1], [], []>} : vector<16x128xbf16>, vector<128x32xbf16>, vector<16x32xf32> -> vector<16x32xf32>
    %c0_58 = arith.constant 0 : index
    %c0_59 = arith.constant 0 : index
    %150 = vector.load %arg8[%c0_58, %c0_59] : memref<1x32xf32, #tpu.memory_space<vmem>>, vector<1x32xf32>
    %151 = vector.broadcast %150 : vector<1x32xf32> to vector<16x32xf32>
    %152 = arith.addf %149, %151 : vector<16x32xf32>
    %153 = arith.addf %114, %152 : vector<16x32xf32>
    %c0_60 = arith.constant 0 : index
    %c0_61 = arith.constant 0 : index
    %154 = vector.load %arg13[%c0_60, %c0_61] : memref<16x32xf32, #tpu.memory_space<vmem>>, vector<16x32xf32>
    tpu.vector_store %arg13[%c0_60, %c0_61], %153 {strides = array<i32>} : memref<16x32xf32, #tpu.memory_space<vmem>>, vector<16x32xf32>,
    return
  }
  func.func @transform_0(%arg0: i32) -> (i32, i32) {
    %c0_i32 = arith.constant 0 : i32
    %c0_i32_0 = arith.constant 0 : i32
    return %arg0, %c0_i32 : i32, i32
  }
  func.func @transform_1(%arg0: i32) -> (i32, i32) {
    %c0_i32 = arith.constant 0 : i32
    %c0_i32_0 = arith.constant 0 : i32
    %c0_i32_1 = arith.constant 0 : i32
    return %c0_i32, %c0_i32_0 : i32, i32
  }
  func.func @transform_2(%arg0: i32) -> (i32, i32) {
    %c0_i32 = arith.constant 0 : i32
    %c0_i32_0 = arith.constant 0 : i32
    %c0_i32_1 = arith.constant 0 : i32
    return %c0_i32, %c0_i32_0 : i32, i32
  }
  func.func @transform_3(%arg0: i32) -> (i32, i32) {
    %c0_i32 = arith.constant 0 : i32
    %c0_i32_0 = arith.constant 0 : i32
    %c0_i32_1 = arith.constant 0 : i32
    return %c0_i32, %c0_i32_0 : i32, i32
  }
  func.func @transform_4(%arg0: i32) -> (i32, i32) {
    %c0_i32 = arith.constant 0 : i32
    %c0_i32_0 = arith.constant 0 : i32
    %c0_i32_1 = arith.constant 0 : i32
    return %c0_i32, %c0_i32_0 : i32, i32
  }
  func.func @transform_5(%arg0: i32) -> (i32, i32) {
    %c0_i32 = arith.constant 0 : i32
    %c0_i32_0 = arith.constant 0 : i32
    %c0_i32_1 = arith.constant 0 : i32
    return %c0_i32, %c0_i32_0 : i32, i32
  }
  func.func @transform_6(%arg0: i32) -> (i32, i32) {
    %c0_i32 = arith.constant 0 : i32
    %c0_i32_0 = arith.constant 0 : i32
    %c0_i32_1 = arith.constant 0 : i32
    return %c0_i32, %c0_i32_0 : i32, i32
  }
  func.func @transform_7(%arg0: i32) -> (i32, i32) {
    %c0_i32 = arith.constant 0 : i32
    %c0_i32_0 = arith.constant 0 : i32
    %c0_i32_1 = arith.constant 0 : i32
    return %c0_i32, %c0_i32_0 : i32, i32
  }
  func.func @transform_8(%arg0: i32) -> (i32, i32) {
    %c0_i32 = arith.constant 0 : i32
    %c0_i32_0 = arith.constant 0 : i32
    %c0_i32_1 = arith.constant 0 : i32
    return %c0_i32, %c0_i32_0 : i32, i32
  }
  func.func @transform_9(%arg0: i32) -> (i32, i32) {
    %c0_i32 = arith.constant 0 : i32
    %c0_i32_0 = arith.constant 0 : i32
    %c0_i32_1 = arith.constant 0 : i32
    return %c0_i32, %c0_i32_0 : i32, i32
  }
  func.func @transform_10(%arg0: i32) -> (i32, i32) {
    %c0_i32 = arith.constant 0 : i32
    %c0_i32_0 = arith.constant 0 : i32
    %c0_i32_1 = arith.constant 0 : i32
    return %c0_i32, %c0_i32_0 : i32, i32
  }
  func.func @transform_11(%arg0: i32) -> (i32, i32) {
    %c0_i32 = arith.constant 0 : i32
    %c0_i32_0 = arith.constant 0 : i32
    %c0_i32_1 = arith.constant 0 : i32
    return %c0_i32, %c0_i32_0 : i32, i32
  }
  func.func @transform_12(%arg0: i32) -> (i32, i32) {
    %c0_i32 = arith.constant 0 : i32
    %c0_i32_0 = arith.constant 0 : i32
    return %arg0, %c0_i32 : i32, i32
  }
  func.func @transform_13(%arg0: i32) -> (i32, i32, i32) {
    %c0_i32 = arith.constant 0 : i32
    %c0_i32_0 = arith.constant 0 : i32
    %c0_i32_1 = arith.constant 0 : i32
    return %arg0, %c0_i32, %c0_i32_0 : i32, i32, i32
  }
}

</mosaic_0001>

<bundles_post_ra>
// kernel: transformer_encoder_forward.2
= control target key start
LH: loop header
LB: loop body
LE: loop exit
PB: predicated region body
PF: predicated region fallthrough
CT: control target
= control target key end

     0   :  { %vm47_vm0 = vcmask 261120   ;;  %s2115_s0 = inlined_call_operand.vmem [shape: f32[16,32], index: 0, kind: input, shape index: {}]   ;;  %s2116_s1 = inlined_call_operand.vmem [shape: bf16[32,96], index: 1, kind: input, shape index: {}]   ;;  %s2117_s2 = inlined_call_operand.vmem [shape: bf16[32,32], index: 2, kind: input, shape index: {}]   ;;  %s2118_s3 = inlined_call_operand.vmem [shape: f32[1,32], index: 3, kind: input, shape index: {}]   ;;  %s2119_s4 = inlined_call_operand.vmem [shape: bf16[32,128], index: 4, kind: input, shape index: {}]   ;;  %s2120_s5 = inlined_call_operand.vmem [shape: f32[1,128], index: 5, kind: input, shape index: {}]   ;;  %s2121_s6 = inlined_call_operand.vmem [shape: bf16[128,32], index: 6, kind: input, shape index: {}]   ;;  %s2122_s7 = inlined_call_operand.vmem [shape: f32[1,32], index: 7, kind: input, shape index: {}]   ;;  %s2123_s8 = inlined_call_operand.vmem [shape: f32[1,32], index: 8, kind: input, shape index: {}]   ;;  %s2124_s9 = inlined_call_operand.vmem [shape: f32[1,32], index: 9, kind: input, shape index: {}]   ;;  %s2125_s10 = inlined_call_operand.vmem [shape: f32[1,32], index: 10, kind: input, shape index: {}]   ;;  %s2126_s11 = inlined_call_operand.vmem [shape: f32[1,32], index: 11, kind: input, shape index: {}]   ;;  %s2127_s12 = inlined_call_operand.vmem [shape: f32[16,32], index: 12, kind: output, shape index: {0}]   ;;  %s2128_s13 = inlined_call_operand.hbm [shape: f32[2,8,8], index: 13, kind: output, shape index: {1}]  }
   0x1   :  { %v1831_v0 = vld [vmem:[%s2115_s0] sm:$0xff]  ;;  %v1836_v1 = vld [vmem:[%s2115_s0 + $0x8] sm:$0xff] }
   0x2   :  { %v48_v2 = vsel %vm47_vm0, %v1831_v0, 0.0  ;;  %v51_v3 = vsel %vm47_vm0, %v1836_v1, 0.0 }
   0x3   :  { %49 = vadd.xlane.f32.xlu0 %v48_v2 }
   0x7   :  { %52 = vadd.xlane.f32.xlu0 %v51_v3 }
   0x8   :  { %19 = vsyncpa [#allocation3], 0  ;;  %v1662_v14 = vld [vmem:[%s2116_s1] sm:$0xff]   ;;  %v1740_v15 = vmov 0.0   ;;  %v1663_v16 = vld [vmem:[%s2116_s1 + $0x8] sm:$0xff]   ;;  %vm1741_vm1 = vmmov 0  }
   0x9   :  { %1489 = vmatprep.subr.bf16.mxu0 %v1740_v15  ;;  %1509 = vmatprep.subr.bf16.mxu1 %v1740_v15  ;;  %v1399_v25 = vld [vmem:[%s2123_s8] ss:$0 sm:$0xff]  ;;  %s1742_s8 = smov 96   ;;  %vm159_vm2 = vcmask 64512   ;;  %s1744_s18 = smov 88   ;;  %vm288_vm3 = vcmask 1043456  }
   0xa   :  { %1490 = vmatpush3.bf16.msra.mxu0 %v1662_v14  ;;  %1493 = vmatprep.mubr.msk.bf16.mxu0 %vm1741_vm1, %v1740_v15  ;;  %v1400_v29 = vld [vmem:[%s2124_s9] ss:$0 sm:$0xff]  ;;  %s1743_s9 = smov 64   ;;  %s1745_s19 = smov 120   ;;  %vm1072_vm4 = vcmask 130048   ;;  %vm1075_vm5 = vcmask 195584  }
   0xb   :  { %1491 = vmatprep.subr.bf16.mxu0 %v1740_v15  ;;  %1511 = vmatprep.mubr.msk.bf16.mxu1 %vm1741_vm1, %v1740_v15  ;;  %s1746_s20 = smov 56   ;;  %s1747_s21 = smov 80  }
   0xc   :  { %s1748_s22 = smov 112   ;;  %s1749_s23 = smov 48  }
   0xd   :  { %s1750_s24 = smov 72   ;;  %s1751_s25 = smov 104  }
   0xe   :  { %1492 = vmatpush3.bf16.msra.mxu0 %v1663_v16  ;;  %s1752_s26 = smov 40   ;;  %s1753_s27 = smov 8  }
   0xf   :  { %1497 = vmatprep.subr.bf16.mxu0 %v1740_v15  ;;  %s1754_s28 = smov 16   ;;  %s1755_s1 = smov 24  }
  0x10   :  { %s1756_s16 = smov [#allocation2]  }
  0x11   :  { %s1386_s17 = sshll.u32 %s1756_s16, 4  ;;  %s1387_s17 = int_to_ptr.vmem [resolvable:$true] %s1386_s17 }
  0x12   :  { %p1721_p1 = scmp.lt.s32.totalorder %s1387_s17, %s1387_s17 }
  0x90   :  { %v50_v4 = vpop.xlane.xlu0 %49 }
  0x91   :  { %v55_v5 = vmul.f32 0.03125, %v50_v4 }
  0x93   :  { %v57_v6 = vsub.f32 %v1831_v0, %v55_v5 }
  0x94   :  { %v53_v7 = vpop.xlane.xlu0 %52 }
  0x95   :  { %v56_v8 = vmul.f32 0.03125, %v53_v7  ;;  %v59_v9 = vmul.f32 %v57_v6, %v57_v6 }
  0x97   :  { %v58_v10 = vsub.f32 %v1836_v1, %v56_v8  ;;  %v61_v11 = vsel %vm47_vm0, %v59_v9, 0.0 }
  0x98   :  { %62 = vadd.xlane.f32.xlu1 %v61_v11 }
  0x99   :  { %v60_v12 = vmul.f32 %v58_v10, %v58_v10 }
  0x9b   :  { %v64_v13 = vsel %vm47_vm0, %v60_v12, 0.0 }
  0x9c   :  { %65 = vadd.xlane.f32.xlu1 %v64_v13 }
 0x125   :  { %v63_v17 = vpop.xlane.xlu1 %62 }
 0x126   :  { %v67_v18 = vmul.f32 0.03125, %v63_v17 }
 0x128   :  { %v69_v19 = vadd.f32 1e-05, %v67_v18 }
 0x129   :  { %v66_v20 = vpop.xlane.xlu1 %65 }
 0x12a   :  { %1676 = vrsqrt.f32 %v69_v19  ;;  %v68_v21 = vmul.f32 0.03125, %v66_v20 }
 0x12c   :  { %v70_v22 = vadd.f32 1e-05, %v68_v21 }
 0x12e   :  { %1678 = vrsqrt.f32 %v70_v22 }
 0x134   :  { %v1677_v23 = vpop.eup %1676 }
 0x135   :  { %v73_v24 = vmul.f32 %v1677_v23, %v57_v6 }
 0x137   :  { %v82_v28 = vmul.f32 %v1399_v25, %v73_v24 }
 0x138   :  { %v1679_v26 = vpop.eup %1678 }
 0x139   :  { %v74_v27 = vmul.f32 %v1679_v26, %v58_v10  ;;  %v91_v31 = vadd.f32 %v1400_v29, %v82_v28 }
 0x13b   :  { %v83_v30 = vmul.f32 %v1399_v25, %v74_v27 }
 0x13d   :  { %v92_v32 = vadd.f32 %v1400_v29, %v83_v30 }
 0x13f   :  { %v93_v33 = vpack.c.bf16 %v92_v32, %v91_v31 }
 0x141   :  { %1494 = vmatmul.mubr.msk.bf16.vlgmr.msra.gmra.mrb[0].mxu0 %vm47_vm0, %v93_v33 }
 0x142   :  { %1499 = vmatprep.mubr.msk.bf16.mxu0 %vm1741_vm1, %v1740_v15 }
 0x214   :  { %v147_v34 = vpop.f32.mrb[0].mxu0 }
 0x215   :  { %v1869_v35 = vpack.c.bf16 %v147_v34, %v147_v34  ;;  %v1495_v36 = vpop.f32.mrb[1].mxu0 }
 0x216   :  { %v150_v37 = vpop.f32.mrb[2].mxu0 }
 0x217   :  { %v1871_v38 = vpack.c.bf16 %v150_v37, %v150_v37  ;;  %157 = vrot.lane.b32.xlu0 %v1869_v35, %s1742_s8  ;;  %v1496_v39 = vpop.f32.mrb[3].mxu0 }
 0x219   :  { %207 = vrot.lane.b32.xlu1 %v1871_v38, %s1742_s8  ;;  %s1716_s8 = scalar_lea.vmem %s1387_s17, 256 }
 0x21a   :  { %p1717_p0 = scmp.ne.s32.totalorder %s1387_s17, %s1716_s8  ;;  %p1722_p2 = scmp.lt.s32.totalorder %s1716_s8, %s1716_s8 }
 0x21c   :  { %p1723_p3 = por %p1722_p2, %p1721_p1 }
 0x21e   :  { %p1724_p4 = pnand %p1723_p3, %p1717_p0 }
 0x289   :  { %v158_v40 = vpop.permute.xlu0 %157 }
 0x28a   :  { %v164_v41 = vsel %vm159_vm2, %v158_v40, 0 }
 0x28b   :  { %1498 = vmatpush3.bf16.xpose.msra.mxu0 %v164_v41  ;;  %v208_v42 = vpop.permute.xlu1 %207 }
 0x28c   :  { %1503 = vmatprep.subr.bf16.mxu0 %v1740_v15  ;;  %v213_v43 = vsel %vm159_vm2, %v208_v42, 0 }
 0x292   :  { %1500 = vmatmul.mubr.msk.bf16.vlgmr.msra.gmra.mrb[4].mxu0 %vm159_vm2, %v1869_v35 }
 0x293   :  { %1504 = vmatpush3.bf16.xpose.msra.mxu0 %v213_v43  ;;  %1505 = vmatprep.mubr.msk.bf16.mxu0 %vm1741_vm1, %v1740_v15 }
 0x294   :  { %1515 = vmatprep.subr.bf16.mxu0 %v1740_v15 }
 0x29a   :  { %1506 = vmatmul.mubr.msk.bf16.vlgmr.msra.gmra.mrb[8].mxu0 %vm159_vm2, %v1871_v38 }
 0x29b   :  { %1517 = vmatprep.mubr.msk.bf16.mxu0 %vm1741_vm1, %v1740_v15 }
 0x365   :  { %v200_v44 = vpop.f32.mrb[4].mxu0 }
 0x366   :  { %v1501_v45 = vpop.f32.mrb[5].mxu0  ;;  %v255_v46 = vsel %vm159_vm2, %v200_v44, -inf }
 0x367   :  { %256 = vmax.xlane.f32.xlu1 %v255_v46  ;;  %v203_v47 = vpop.f32.mrb[6].mxu0 }
 0x368   :  { %v1502_v48 = vpop.f32.mrb[7].mxu0 }
 0x36d   :  { %v249_v49 = vpop.f32.mrb[8].mxu0 }
 0x36e   :  { %v1507_v50 = vpop.f32.mrb[9].mxu0  ;;  %v258_v51 = vsel %vm159_vm2, %v249_v49, -inf }
 0x36f   :  { %259 = vmax.xlane.f32.xlu0 %v258_v51  ;;  %v252_v52 = vpop.f32.mrb[10].mxu0 }
 0x370   :  { %v1508_v53 = vpop.f32.mrb[11].mxu0 }
 0x378   :  { %332 = vrot.lane.b32.xlu1 %v1871_v38, %s1743_s9 }
 0x37c   :  { %382 = vrot.lane.b32.xlu1 %v1869_v35, %s1744_s18 }
 0x3f4   :  { %v257_v54 = vpop.xlane.xlu1 %256 }
 0x3f5   :  { %v261_v55 = vsub.f32 %v200_v44, %v257_v54 }
 0x3f7   :  { %v263_v56 = vmul.f32 1.442695, %v261_v55 }
 0x3f8   :  { %v333_v57 = vpop.permute.xlu1 %332 }
 0x3f9   :  { %1680 = vpow2.f32 %v263_v56  ;;  %v338_v58 = vsel %vm288_vm3, %v333_v57, 0 }
 0x3fa   :  { %1516 = vmatpush3.bf16.msra.mxu0 %v338_v58 }
 0x3fb   :  { %1527 = vmatprep.subr.bf16.mxu0 %v1740_v15 }
 0x3fc   :  { %v260_v59 = vpop.xlane.xlu0 %259  ;;  %v383_v5 = vpop.permute.xlu1 %382 }
 0x3fd   :  { %v262_v60 = vsub.f32 %v249_v49, %v260_v59  ;;  %v388_v12 = vsel %vm159_vm2, %v383_v5, 0 }
 0x3ff   :  { %v265_v61 = vmul.f32 1.442695, %v262_v60 }
 0x401   :  { %1682 = vpow2.f32 %v265_v61 }
 0x403   :  { %v1681_v62 = vpop.eup %1680 }
 0x404   :  { %v267_v63 = vsel %vm159_vm2, %v1681_v62, 0.0 }
 0x405   :  { %268 = vadd.xlane.f32.xlu0 %v267_v63 }
 0x40b   :  { %v1683_v2 = vpop.eup %1682 }
 0x40c   :  { %v270_v3 = vsel %vm159_vm2, %v1683_v2, 0.0 }
 0x40d   :  { %271 = vadd.xlane.f32.xlu1 %v270_v3 }
 0x41b   :  { %283 = vrot.lane.b32.xlu0 %v1869_v35, %s1743_s9 }
 0x41e   :  { %432 = vrot.lane.b32.xlu1 %v1871_v38, %s1744_s18 }
 0x41f   :  { %380 = vrot.lane.b32.xlu0 %v1869_v35, %s1745_s19 }
 0x422   :  { %430 = vrot.lane.b32.xlu1 %v1871_v38, %s1745_s19 }
 0x492   :  { %v269_v4 = vpop.xlane.xlu0 %268 }
 0x493   :  { %1684 = vrcp.f32 %v269_v4 }
 0x496   :  { %v284_v6 = vpop.permute.xlu0 %283 }
 0x497   :  { %v290_v7 = vsel %vm288_vm3, %v284_v6, 0 }
 0x498   :  { %1510 = vmatpush3.bf16.msra.mxu1 %v290_v7 }
 0x499   :  { %1521 = vmatprep.subr.bf16.mxu1 %v1740_v15 }
 0x49a   :  { %v272_v8 = vpop.xlane.xlu1 %271  ;;  %v381_v18 = vpop.permute.xlu0 %380 }
 0x49b   :  { %1686 = vrcp.f32 %v272_v8 }
 0x49d   :  { %v1685_v9 = vpop.eup %1684 }
 0x49e   :  { %v277_v10 = vmul.f32 %v1685_v9, %v1681_v62  ;;  %v433_v16 = vpop.permute.xlu1 %432 }
 0x49f   :  { %v438_v19 = vsel %vm159_vm2, %v433_v16, 0 }
 0x4a0   :  { %v281_v11 = vpack.c.bf16 %v277_v10, %v277_v10  ;;  %279 = vst.msk [vmem:[#allocation2] sm:$0xff] %vm159_vm2, %v277_v10 }
 0x4a2   :  { %1512 = vmatmul.mubr.msk.bf16.vlgmr.msra.gmra.mrb[0].mxu1 %vm159_vm2, %v281_v11  ;;  %v431_v20 = vpop.permute.xlu1 %430 }
 0x4a3   :  { %1522 = vmatpush3.bf16.xpose.msra.mxu1 %v388_v12  ;;  %1523 = vmatprep.mubr.msk.bf16.mxu1 %vm1741_vm1, %v1740_v15 }
 0x4a4   :  { %1533 = vmatprep.subr.bf16.mxu1 %v1740_v15 }
 0x4a5   :  { %v1687_v13 = vpop.eup %1686 }
 0x4a6   :  { %v278_v14 = vmul.f32 %v1687_v13, %v1683_v2 }
 0x4a8   :  { %280 = vst.msk [vmem:[#allocation2 + $0x8] sm:$0xff] %vm159_vm2, %v278_v14  ;;  %v282_v17 = vpack.c.bf16 %v278_v14, %v278_v14 }
 0x4aa   :  { %1518 = vmatmul.mubr.msk.bf16.vlgmr.msra.gmra.mrb[12].mxu0 %vm159_vm2, %v282_v17  ;;  %1524 = vmatmul.mubr.msk.bf16.vlgmr.msra.gmra.mrb[4].mxu1 %vm159_vm2, %v381_v18 }
 0x4ab   :  { %1528 = vmatpush3.bf16.xpose.msra.mxu0 %v438_v19  ;;  %1529 = vmatprep.mubr.msk.bf16.mxu0 %vm1741_vm1, %v1740_v15 }
 0x4ac   :  { %1539 = vmatprep.subr.bf16.mxu0 %v1740_v15  ;;  %1535 = vmatprep.mubr.msk.bf16.mxu1 %vm1741_vm1, %v1740_v15 }
 0x4b2   :  { %1530 = vmatmul.mubr.msk.bf16.vlgmr.msra.gmra.mrb[16].mxu0 %vm159_vm2, %v431_v20 }
 0x4b3   :  { %1541 = vmatprep.mubr.msk.bf16.mxu0 %vm1741_vm1, %v1740_v15 }
 0x575   :  { %v1919_v21 = vpop.f32.mrb[0].mxu1 }
 0x576   :  { %v1513_v22 = vpop.f32.mrb[1].mxu1 }
 0x577   :  { %v329_v23 = vpop.f32.mrb[2].mxu1 }
 0x578   :  { %v1514_v24 = vpop.f32.mrb[3].mxu1 }
 0x57d   :  { %v1921_v25 = vpop.f32.mrb[12].mxu0  ;;  %v424_v26 = vpop.f32.mrb[4].mxu1 }
 0x57e   :  { %v1519_v27 = vpop.f32.mrb[13].mxu0  ;;  %v1525_v28 = vpop.f32.mrb[5].mxu1  ;;  %v480_v29 = vsel %vm159_vm2, %v424_v26, -inf }
 0x57f   :  { %481 = vmax.xlane.f32.xlu0 %v480_v29  ;;  %v377_v30 = vpop.f32.mrb[14].mxu0  ;;  %v427_v31 = vpop.f32.mrb[6].mxu1 }
 0x580   :  { %v1520_v32 = vpop.f32.mrb[15].mxu0  ;;  %v1526_v33 = vpop.f32.mrb[7].mxu1 }
 0x585   :  { %v474_v34 = vpop.f32.mrb[16].mxu0 }
 0x586   :  { %v1531_v36 = vpop.f32.mrb[17].mxu0  ;;  %v483_v37 = vsel %vm159_vm2, %v474_v34, -inf }
 0x587   :  { %484 = vmax.xlane.f32.xlu1 %v483_v37  ;;  %v477_v39 = vpop.f32.mrb[18].mxu0 }
 0x588   :  { %v1532_v40 = vpop.f32.mrb[19].mxu0 }
 0x598   :  { %554 = vrot.lane.b32.xlu1 %v1871_v38, %s1746_s20 }
 0x59c   :  { %604 = vrot.lane.b32.xlu1 %v1869_v35, %s1747_s21 }
 0x5a0   :  { %654 = vrot.lane.b32.xlu1 %v1871_v38, %s1747_s21 }
 0x5a4   :  { %652 = vrot.lane.b32.xlu1 %v1871_v38, %s1748_s22 }
 0x60c   :  { %v482_v41 = vpop.xlane.xlu0 %481 }
 0x60d   :  { %v486_v42 = vsub.f32 %v424_v26, %v482_v41 }
 0x60f   :  { %v488_v43 = vmul.f32 1.442695, %v486_v42 }
 0x611   :  { %1688 = vpow2.f32 %v488_v43 }
 0x614   :  { %v485_v44 = vpop.xlane.xlu1 %484 }
 0x615   :  { %v487_v45 = vsub.f32 %v474_v34, %v485_v44 }
 0x617   :  { %v490_v46 = vmul.f32 1.442695, %v487_v45 }
 0x618   :  { %v555_v47 = vpop.permute.xlu1 %554 }
 0x619   :  { %1690 = vpow2.f32 %v490_v46  ;;  %v560_v48 = vsel %vm288_vm3, %v555_v47, 0 }
 0x61a   :  { %1540 = vmatpush3.bf16.msra.mxu0 %v560_v48 }
 0x61b   :  { %v1689_v49 = vpop.eup %1688  ;;  %1551 = vmatprep.subr.bf16.mxu0 %v1740_v15 }
 0x61c   :  { %v492_v50 = vsel %vm159_vm2, %v1689_v49, 0.0  ;;  %v605_v60 = vpop.permute.xlu1 %604 }
 0x61d   :  { %493 = vadd.xlane.f32.xlu0 %v492_v50  ;;  %v610_v2 = vsel %vm159_vm2, %v605_v60, 0 }
 0x620   :  { %v655_v63 = vpop.permute.xlu1 %654 }
 0x621   :  { %v660_v4 = vsel %vm159_vm2, %v655_v63, 0 }
 0x623   :  { %v1691_v51 = vpop.eup %1690 }
 0x624   :  { %v495_v52 = vsel %vm159_vm2, %v1691_v51, 0.0  ;;  %v653_v6 = vpop.permute.xlu1 %652 }
 0x625   :  { %496 = vadd.xlane.f32.xlu0 %v495_v52 }
 0x63b   :  { %506 = vrot.lane.b32.xlu0 %v1869_v35, %s1746_s20 }
 0x63f   :  { %602 = vrot.lane.b32.xlu0 %v1869_v35, %s1748_s22 }
 0x6aa   :  { %v494_v53 = vpop.xlane.xlu0 %493 }
 0x6ab   :  { %1692 = vrcp.f32 %v494_v53 }
 0x6b2   :  { %v497_v54 = vpop.xlane.xlu0 %496 }
 0x6b3   :  { %1694 = vrcp.f32 %v497_v54 }
 0x6b5   :  { %v1693_v55 = vpop.eup %1692 }
 0x6b6   :  { %v502_v56 = vmul.f32 %v1693_v55, %v1689_v49  ;;  %v507_v57 = vpop.permute.xlu0 %506 }
 0x6b7   :  { %v512_v58 = vsel %vm288_vm3, %v507_v57, 0 }
 0x6b8   :  { %1534 = vmatpush3.bf16.msra.mxu1 %v512_v58  ;;  %v504_v59 = vpack.c.bf16 %v502_v56, %v502_v56 }
 0x6b9   :  { %1545 = vmatprep.subr.bf16.mxu1 %v1740_v15 }
 0x6ba   :  { %v603_v5 = vpop.permute.xlu0 %602 }
 0x6bb   :  { %1536 = vmatmul.mubr.msk.bf16.vlgmr.msra.gmra.mrb[8].mxu1 %vm159_vm2, %v504_v59 }
 0x6bc   :  { %1547 = vmatprep.mubr.msk.bf16.mxu1 %vm1741_vm1, %v1740_v15 }
 0x6bd   :  { %v1695_v61 = vpop.eup %1694 }
 0x6be   :  { %v503_v62 = vmul.f32 %v1695_v61, %v1691_v51 }
 0x6c0   :  { %v505_v3 = vpack.c.bf16 %v503_v62, %v503_v62 }
 0x6c1   :  { %1546 = vmatpush3.bf16.xpose.msra.mxu1 %v610_v2 }
 0x6c2   :  { %1542 = vmatmul.mubr.msk.bf16.vlgmr.msra.gmra.mrb[20].mxu0 %vm159_vm2, %v505_v3  ;;  %1557 = vmatprep.subr.bf16.mxu1 %v1740_v15 }
 0x6c3   :  { %1552 = vmatpush3.bf16.xpose.msra.mxu0 %v660_v4  ;;  %1553 = vmatprep.mubr.msk.bf16.mxu0 %vm1741_vm1, %v1740_v15 }
 0x6c4   :  { %1563 = vmatprep.subr.bf16.mxu0 %v1740_v15 }
 0x6c8   :  { %1548 = vmatmul.mubr.msk.bf16.vlgmr.msra.gmra.mrb[12].mxu1 %vm159_vm2, %v603_v5 }
 0x6c9   :  { %1559 = vmatprep.mubr.msk.bf16.mxu1 %vm1741_vm1, %v1740_v15 }
 0x6ca   :  { %1554 = vmatmul.mubr.msk.bf16.vlgmr.msra.gmra.mrb[24].mxu0 %vm159_vm2, %v653_v6 }
 0x6cb   :  { %1565 = vmatprep.mubr.msk.bf16.mxu0 %vm1741_vm1, %v1740_v15 }
 0x78e   :  { %v1953_v7 = vpop.f32.mrb[8].mxu1 }
 0x78f   :  { %v1537_v8 = vpop.f32.mrb[9].mxu1 }
 0x790   :  { %v551_v9 = vpop.f32.mrb[10].mxu1 }
 0x791   :  { %v1538_v10 = vpop.f32.mrb[11].mxu1 }
 0x795   :  { %v1955_v11 = vpop.f32.mrb[20].mxu0 }
 0x796   :  { %v1647_v12 = vpack.i.bf16 %v1955_v11, %v1953_v7  ;;  %v1543_v13 = vpop.f32.mrb[21].mxu0 }
 0x797   :  { %v599_v14 = vpop.f32.mrb[22].mxu0 }
 0x798   :  { %v1544_v16 = vpop.f32.mrb[23].mxu0 }
 0x79b   :  { %v646_v17 = vpop.f32.mrb[12].mxu1 }
 0x79c   :  { %v1549_v18 = vpop.f32.mrb[13].mxu1  ;;  %v702_v19 = vsel %vm159_vm2, %v646_v17, -inf }
 0x79d   :  { %703 = vmax.xlane.f32.xlu0 %v702_v19  ;;  %v649_v20 = vpop.f32.mrb[14].mxu1  ;;  %v696_v22 = vpop.f32.mrb[24].mxu0 }
 0x79e   :  { %v1550_v23 = vpop.f32.mrb[15].mxu1  ;;  %v1555_v24 = vpop.f32.mrb[25].mxu0  ;;  %v705_v26 = vsel %vm159_vm2, %v696_v22, -inf }
 0x79f   :  { %706 = vmax.xlane.f32.xlu1 %v705_v26  ;;  %v699_v27 = vpop.f32.mrb[26].mxu0 }
 0x7a0   :  { %v1556_v28 = vpop.f32.mrb[27].mxu0 }
 0x7b0   :  { %776 = vrot.lane.b32.xlu1 %v1871_v38, %s1749_s23 }
 0x7b4   :  { %826 = vrot.lane.b32.xlu1 %v1869_v35, %s1750_s24 }
 0x7b8   :  { %876 = vrot.lane.b32.xlu1 %v1871_v38, %s1750_s24 }
 0x7bc   :  { %874 = vrot.lane.b32.xlu1 %v1871_v38, %s1751_s25 }
 0x82a   :  { %v704_v29 = vpop.xlane.xlu0 %703 }
 0x82b   :  { %v708_v30 = vsub.f32 %v646_v17, %v704_v29 }
 0x82c   :  { %v707_v31 = vpop.xlane.xlu1 %706 }
 0x82d   :  { %v710_v32 = vmul.f32 1.442695, %v708_v30  ;;  %v709_v33 = vsub.f32 %v696_v22, %v707_v31 }
 0x82f   :  { %1696 = vpow2.f32 %v710_v32  ;;  %v712_v34 = vmul.f32 1.442695, %v709_v33 }
 0x830   :  { %v777_v36 = vpop.permute.xlu1 %776 }
 0x831   :  { %1698 = vpow2.f32 %v712_v34  ;;  %v782_v37 = vsel %vm288_vm3, %v777_v36, 0 }
 0x832   :  { %1564 = vmatpush3.bf16.msra.mxu0 %v782_v37 }
 0x833   :  { %1575 = vmatprep.subr.bf16.mxu0 %v1740_v15 }
 0x834   :  { %v827_v48 = vpop.permute.xlu1 %826 }
 0x835   :  { %v832_v54 = vsel %vm159_vm2, %v827_v48, 0 }
 0x838   :  { %v877_v53 = vpop.permute.xlu1 %876 }
 0x839   :  { %v1697_v39 = vpop.eup %1696  ;;  %v882_v56 = vsel %vm159_vm2, %v877_v53, 0 }
 0x83a   :  { %v714_v40 = vsel %vm159_vm2, %v1697_v39, 0.0 }
 0x83b   :  { %v1699_v41 = vpop.eup %1698  ;;  %715 = vadd.xlane.f32.xlu0 %v714_v40 }
 0x83c   :  { %v717_v42 = vsel %vm159_vm2, %v1699_v41, 0.0  ;;  %v875_v58 = vpop.permute.xlu1 %874 }
 0x83f   :  { %718 = vadd.xlane.f32.xlu0 %v717_v42  ;;  %v1665_v42 = vld [vmem:[%s2117_s2 + $0x8] sm:$0xff]  }
 0x855   :  { %728 = vrot.lane.b32.xlu0 %v1869_v35, %s1749_s23 }
 0x859   :  { %824 = vrot.lane.b32.xlu0 %v1869_v35, %s1751_s25 }
 0x8c8   :  { %v716_v43 = vpop.xlane.xlu0 %715 }
 0x8c9   :  { %1700 = vrcp.f32 %v716_v43 }
 0x8cc   :  { %v719_v44 = vpop.xlane.xlu0 %718 }
 0x8cd   :  { %1702 = vrcp.f32 %v719_v44 }
 0x8d0   :  { %v729_v45 = vpop.permute.xlu0 %728 }
 0x8d1   :  { %v734_v46 = vsel %vm288_vm3, %v729_v45, 0 }
 0x8d2   :  { %1558 = vmatpush3.bf16.msra.mxu1 %v734_v46 }
 0x8d3   :  { %v1701_v47 = vpop.eup %1700  ;;  %1569 = vmatprep.subr.bf16.mxu1 %v1740_v15 }
 0x8d4   :  { %v724_v49 = vmul.f32 %v1701_v47, %v1697_v39  ;;  %v825_v57 = vpop.permute.xlu0 %824 }
 0x8d6   :  { %v726_v50 = vpack.c.bf16 %v724_v49, %v724_v49 }
 0x8d7   :  { %v1703_v51 = vpop.eup %1702 }
 0x8d8   :  { %v725_v52 = vmul.f32 %v1703_v51, %v1699_v41  ;;  %1560 = vmatmul.mubr.msk.bf16.vlgmr.msra.gmra.mrb[16].mxu1 %vm159_vm2, %v726_v50  ;;  %v1664_v41 = vld [vmem:[%s2117_s2] sm:$0xff]  }
 0x8d9   :  { %1571 = vmatprep.mubr.msk.bf16.mxu1 %vm1741_vm1, %v1740_v15 }
 0x8da   :  { %v727_v55 = vpack.c.bf16 %v725_v52, %v725_v52 }
 0x8db   :  { %1570 = vmatpush3.bf16.xpose.msra.mxu1 %v832_v54 }
 0x8dc   :  { %1566 = vmatmul.mubr.msk.bf16.vlgmr.msra.gmra.mrb[28].mxu0 %vm159_vm2, %v727_v55  ;;  %1581 = vmatprep.subr.bf16.mxu1 %v1740_v15 }
 0x8dd   :  { %1576 = vmatpush3.bf16.xpose.msra.mxu0 %v882_v56  ;;  %1577 = vmatprep.mubr.msk.bf16.mxu0 %vm1741_vm1, %v1740_v15 }
 0x8de   :  { %1587 = vmatprep.subr.bf16.mxu0 %v1740_v15 }
 0x8e2   :  { %1572 = vmatmul.mubr.msk.bf16.vlgmr.msra.gmra.mrb[20].mxu1 %vm159_vm2, %v825_v57 }
 0x8e3   :  { %1583 = vmatprep.mubr.msk.bf16.mxu1 %vm1741_vm1, %v1740_v15 }
 0x8e4   :  { %1578 = vmatmul.mubr.msk.bf16.vlgmr.msra.gmra.mrb[32].mxu0 %vm159_vm2, %v875_v58 }
 0x8e5   :  { %1589 = vmatprep.mubr.msk.bf16.mxu0 %vm1741_vm1, %v1740_v15 }
 0x9ab   :  { %v770_v59 = vpop.f32.mrb[16].mxu1 }
 0x9ac   :  { %v1561_v60 = vpop.f32.mrb[17].mxu1 }
 0x9ad   :  { %v773_v61 = vpop.f32.mrb[18].mxu1 }
 0x9ae   :  { %v1562_v62 = vpop.f32.mrb[19].mxu1 }
 0x9af   :  { %v818_v63 = vpop.f32.mrb[28].mxu0 }
 0x9b0   :  { %v1652_v2 = vpack.i.bf16 %v818_v63, %v770_v59  ;;  %v1567_v3 = vpop.f32.mrb[29].mxu0 }
 0x9b1   :  { %v821_v4 = vpop.f32.mrb[30].mxu0 }
 0x9b2   :  { %v1568_v5 = vpop.f32.mrb[31].mxu0 }
 0x9b5   :  { %v868_v6 = vpop.f32.mrb[20].mxu1 }
 0x9b6   :  { %v1573_v8 = vpop.f32.mrb[21].mxu1  ;;  %v924_v9 = vsel %vm159_vm2, %v868_v6, -inf }
 0x9b7   :  { %925 = vmax.xlane.f32.xlu0 %v924_v9  ;;  %v871_v10 = vpop.f32.mrb[22].mxu1  ;;  %v918_v13 = vpop.f32.mrb[32].mxu0 }
 0x9b8   :  { %v1574_v14 = vpop.f32.mrb[23].mxu1  ;;  %v1579_v16 = vpop.f32.mrb[33].mxu0  ;;  %v927_v17 = vsel %vm159_vm2, %v918_v13, -inf }
 0x9b9   :  { %928 = vmax.xlane.f32.xlu1 %v927_v17  ;;  %v921_v18 = vpop.f32.mrb[34].mxu0 }
 0x9ba   :  { %v1580_v19 = vpop.f32.mrb[35].mxu0 }
 0x9ca   :  { %998 = vrot.lane.b32.xlu1 %v1871_v38, %s1752_s26 }
 0x9ce   :  { %1648 = vrot.lane.b32.xlu1 %v1647_v12, %s1753_s27 }
 0x9d2   :  { %1653 = vrot.lane.b32.xlu1 %v1652_v2, %s1754_s28 }
 0xa44   :  { %v926_v20 = vpop.xlane.xlu0 %925 }
 0xa45   :  { %v930_v22 = vsub.f32 %v868_v6, %v926_v20  ;;  %v1420_v6 = vld [vmem:[%s2118_s3] ss:$0 sm:$0xff] }
 0xa46   :  { %v929_v23 = vpop.xlane.xlu1 %928 }
 0xa47   :  { %v932_v24 = vmul.f32 1.442695, %v930_v22  ;;  %v931_v26 = vsub.f32 %v918_v13, %v929_v23 }
 0xa49   :  { %1704 = vpow2.f32 %v932_v24  ;;  %v934_v27 = vmul.f32 1.442695, %v931_v26 }
 0xa4a   :  { %v999_v28 = vpop.permute.xlu1 %998 }
 0xa4b   :  { %1706 = vpow2.f32 %v934_v27  ;;  %v1004_v29 = vsel %vm288_vm3, %v999_v28, 0 }
 0xa4c   :  { %1588 = vmatpush3.bf16.msra.mxu0 %v1004_v29  ;;  %v1666_v29 = vld [vmem:[%s2119_s4] sm:$0xff]  }
 0xa4d   :  { %1601 = vmatprep.subr.bf16.mxu0 %v1740_v15 }
 0xa4e   :  { %v1649_v52 = vpop.permute.xlu1 %1648 }
 0xa4f   :  { %v1651_v54 = vunpack.i.h.bf16 %v1649_v52  ;;  %v1650_v55 = vunpack.i.l.bf16 %v1649_v52  ;;  %v1675_v52 = vld [vmem:[%s2121_s6 + $0x38] sm:$0xff]  }
 0xa51   :  { %v1071_v59 = vsel %vm159_vm2, %v1921_v25, %v1651_v54  ;;  %v1070_v60 = vsel %vm159_vm2, %v1919_v21, %v1650_v55 }
 0xa52   :  { %v1654_v53 = vpop.permute.xlu1 %1653 }
 0xa53   :  { %v1705_v38 = vpop.eup %1704  ;;  %v1656_v56 = vunpack.i.h.bf16 %v1654_v53  ;;  %v1655_v57 = vunpack.i.l.bf16 %v1654_v53  ;;  %v1426_v53 = vld [vmem:[%s2120_s5] ss:$0 sm:$0xff] }
 0xa54   :  { %v936_v7 = vsel %vm159_vm2, %v1705_v38, 0.0 }
 0xa55   :  { %v1707_v11 = vpop.eup %1706  ;;  %937 = vadd.xlane.f32.xlu0 %v936_v7  ;;  %v1073_v63 = vsel %vm1072_vm4, %v1070_v60, %v1655_v57  ;;  %v1074_v2 = vsel %vm1072_vm4, %v1071_v59, %v1656_v56  ;;  %v1668_v7 = vld [vmem:[%s2121_s6] sm:$0xff]  }
 0xa56   :  { %v939_v12 = vsel %vm159_vm2, %v1707_v11, 0.0 }
 0xa59   :  { %940 = vadd.xlane.f32.xlu0 %v939_v12  ;;  %v1670_v12 = vld [vmem:[%s2121_s6 + $0x10] sm:$0xff]  }
 0xa6f   :  { %950 = vrot.lane.b32.xlu0 %v1869_v35, %s1752_s26 }
 0xae2   :  { %v938_v30 = vpop.xlane.xlu0 %937 }
 0xae3   :  { %1708 = vrcp.f32 %v938_v30  ;;  %v1671_v30 = vld [vmem:[%s2121_s6 + $0x18] sm:$0xff]  }
 0xae6   :  { %v941_v31 = vpop.xlane.xlu0 %940 }
 0xae7   :  { %1710 = vrcp.f32 %v941_v31  ;;  %v1672_v31 = vld [vmem:[%s2121_s6 + $0x20] sm:$0xff]  }
 0xaea   :  { %v951_v32 = vpop.permute.xlu0 %950 }
 0xaeb   :  { %v956_v33 = vsel %vm288_vm3, %v951_v32, 0  ;;  %v1673_v32 = vld [vmem:[%s2121_s6 + $0x28] sm:$0xff]  }
 0xaec   :  { %1582 = vmatpush3.bf16.msra.mxu1 %v956_v33 }
 0xaed   :  { %v1709_v34 = vpop.eup %1708  ;;  %1593 = vmatprep.subr.bf16.mxu1 %v1740_v15 }
 0xaee   :  { %v946_v36 = vmul.f32 %v1709_v34, %v1705_v38  ;;  %v1667_v38 = vld [vmem:[%s2119_s4 + $0x8] sm:$0xff]  }
 0xaf0   :  { %v948_v37 = vpack.c.bf16 %v946_v36, %v946_v36 }
 0xaf1   :  { %v1711_v39 = vpop.eup %1710 }
 0xaf2   :  { %v947_v40 = vmul.f32 %v1711_v39, %v1707_v11  ;;  %1584 = vmatmul.mubr.msk.bf16.vlgmr.msra.gmra.mrb[24].mxu1 %vm159_vm2, %v948_v37  ;;  %v1669_v11 = vld [vmem:[%s2121_s6 + $0x8] sm:$0xff]  }
 0xaf3   :  { %1597 = vmatprep.mubr.msk.bf16.mxu1 %vm1741_vm1, %v1740_v15  ;;  %1594 = vmatpush3.bf16.msra.mxu1 %v1664_v41 }
 0xaf4   :  { %v949_v35 = vpack.c.bf16 %v947_v40, %v947_v40  ;;  %1595 = vmatprep.subr.bf16.mxu1 %v1740_v15 }
 0xaf6   :  { %1590 = vmatmul.mubr.msk.bf16.vlgmr.msra.gmra.mrb[36].mxu0 %vm159_vm2, %v949_v35 }
 0xaf7   :  { %1605 = vmatprep.mubr.msk.bf16.mxu0 %vm1741_vm1, %v1740_v15  ;;  %1596 = vmatpush3.bf16.msra.mxu1 %v1665_v42  ;;  %v1424_v42 = vld [vmem:[%s2125_s10] ss:$0 sm:$0xff] }
 0xaf8   :  { %1609 = vmatprep.subr.bf16.mxu1 %v1740_v15  ;;  %1602 = vmatpush3.bf16.msra.mxu0 %v1666_v29 }
 0xaf9   :  { %1603 = vmatprep.subr.bf16.mxu0 %v1740_v15 }
 0xafc   :  { %1604 = vmatpush3.bf16.msra.mxu0 %v1667_v38 }
 0xbc5   :  { %v992_v43 = vpop.f32.mrb[24].mxu1 }
 0xbc6   :  { %v1585_v44 = vpop.f32.mrb[25].mxu1 }
 0xbc7   :  { %v995_v45 = vpop.f32.mrb[26].mxu1 }
 0xbc8   :  { %v1586_v46 = vpop.f32.mrb[27].mxu1 }
 0xbc9   :  { %v1040_v47 = vpop.f32.mrb[36].mxu0  ;;  %v1425_v46 = vld [vmem:[%s2126_s11] ss:$0 sm:$0xff] }
 0xbca   :  { %v1657_v48 = vpack.i.bf16 %v1040_v47, %v992_v43  ;;  %v1591_v49 = vpop.f32.mrb[37].mxu0 }
 0xbcb   :  { %v1043_v50 = vpop.f32.mrb[38].mxu0 }
 0xbcc   :  { %1658 = vrot.lane.b32.xlu0 %v1657_v48, %s1755_s1  ;;  %v1592_v51 = vpop.f32.mrb[39].mxu0 }
 0xbcd   :  { %v1674_v51 = vld [vmem:[%s2121_s6 + $0x30] sm:$0xff]  }
 0xc3e   :  { %v1659_v58 = vpop.permute.xlu0 %1658 }
 0xc3f   :  { %v1661_v61 = vunpack.i.h.bf16 %v1659_v58  ;;  %v1660_v62 = vunpack.i.l.bf16 %v1659_v58 }
 0xc41   :  { %v1077_v3 = vsel %vm1075_vm5, %v1074_v2, %v1661_v61  ;;  %v1076_v4 = vsel %vm1075_vm5, %v1073_v63, %v1660_v62 }
 0xc42   :  { %v1078_v5 = vpack.c.bf16 %v1077_v3, %v1076_v4 }
 0xc44   :  { %1598 = vmatmul.mubr.msk.bf16.vlgmr.msra.gmra.mrb[28].mxu1 %vm47_vm0, %v1078_v5 }
 0xc45   :  { %1625 = vmatprep.mubr.msk.bf16.mxu1 %vm1741_vm1, %v1740_v15  ;;  %1610 = vmatpush3.bf16.msra.mxu1 %v1668_v7 }
 0xc46   :  { %1611 = vmatprep.subr.bf16.mxu1 %v1740_v15 }
 0xc49   :  { %1612 = vmatpush3.bf16.msra.mxu1 %v1669_v11 }
 0xc4a   :  { %1613 = vmatprep.subr.bf16.mxu1 %v1740_v15 }
 0xc4d   :  { %1614 = vmatpush3.bf16.msra.mxu1 %v1670_v12 }
 0xc4e   :  { %1615 = vmatprep.subr.bf16.mxu1 %v1740_v15 }
 0xc51   :  { %1616 = vmatpush3.bf16.msra.mxu1 %v1671_v30 }
 0xc52   :  { %1617 = vmatprep.subr.bf16.mxu1 %v1740_v15 }
 0xc55   :  { %1618 = vmatpush3.bf16.msra.mxu1 %v1672_v31 }
 0xc56   :  { %1619 = vmatprep.subr.bf16.mxu1 %v1740_v15 }
 0xc59   :  { %1620 = vmatpush3.bf16.msra.mxu1 %v1673_v32 }
 0xc5a   :  { %1621 = vmatprep.subr.bf16.mxu1 %v1740_v15 }
 0xc5d   :  { %1622 = vmatpush3.bf16.msra.mxu1 %v1674_v51 }
 0xc5e   :  { %1623 = vmatprep.subr.bf16.mxu1 %v1740_v15 }
 0xc61   :  { %1624 = vmatpush3.bf16.msra.mxu1 %v1675_v52 }
 0xd17   :  { %v1139_v25 = vpop.f32.mrb[28].mxu1 }
 0xd18   :  { %v1140_v8 = vadd.f32 %v1420_v6, %v1139_v25  ;;  %v1599_v9 = vpop.f32.mrb[29].mxu1 }
 0xd19   :  { %v1142_v21 = vpop.f32.mrb[30].mxu1 }
 0xd1a   :  { %v2028_v10 = vadd.f32 %v1140_v8, %v1831_v0  ;;  %v1143_v13 = vadd.f32 %v1420_v6, %v1142_v21  ;;  %v1600_v14 = vpop.f32.mrb[31].mxu1 }
 0xd1c   :  { %v2031_v16 = vadd.f32 %v1143_v13, %v1836_v1  ;;  %v1148_v17 = vsel %vm47_vm0, %v2028_v10, 0.0 }
 0xd1d   :  { %1149 = vadd.xlane.f32.xlu1 %v1148_v17 }
 0xd1e   :  { %v1151_v18 = vsel %vm47_vm0, %v2031_v16, 0.0 }
 0xd1f   :  { %1152 = vadd.xlane.f32.xlu0 %v1151_v18 }
 0xdaa   :  { %v1150_v19 = vpop.xlane.xlu1 %1149 }
 0xdab   :  { %v1154_v20 = vmul.f32 0.03125, %v1150_v19 }
 0xdac   :  { %v1153_v22 = vpop.xlane.xlu0 %1152 }
 0xdad   :  { %v1156_v23 = vsub.f32 %v2028_v10, %v1154_v20  ;;  %v1155_v0 = vmul.f32 0.03125, %v1153_v22 }
 0xdaf   :  { %v1157_v24 = vsub.f32 %v2031_v16, %v1155_v0  ;;  %v1158_v26 = vmul.f32 %v1156_v23, %v1156_v23 }
 0xdb1   :  { %v1160_v1 = vsel %vm47_vm0, %v1158_v26, 0.0  ;;  %v1159_v27 = vmul.f32 %v1157_v24, %v1157_v24 }
 0xdb2   :  { %1161 = vadd.xlane.f32.xlu0 %v1160_v1 }
 0xdb3   :  { %v1163_v28 = vsel %vm47_vm0, %v1159_v27, 0.0 }
 0xdb6   :  { %1164 = vadd.xlane.f32.xlu0 %v1163_v28 }
 0xe3f   :  { %v1162_v33 = vpop.xlane.xlu0 %1161 }
 0xe40   :  { %v1166_v34 = vmul.f32 0.03125, %v1162_v33 }
 0xe42   :  { %v1168_v36 = vadd.f32 1e-05, %v1166_v34 }
 0xe43   :  { %v1165_v37 = vpop.xlane.xlu0 %1164 }
 0xe44   :  { %1712 = vrsqrt.f32 %v1168_v36  ;;  %v1167_v39 = vmul.f32 0.03125, %v1165_v37 }
 0xe46   :  { %v1169_v40 = vadd.f32 1e-05, %v1167_v39 }
 0xe48   :  { %1714 = vrsqrt.f32 %v1169_v40 }
 0xe4e   :  { %v1713_v35 = vpop.eup %1712 }
 0xe4f   :  { %v1172_v41 = vmul.f32 %v1713_v35, %v1156_v23 }
 0xe51   :  { %v1181_v44 = vmul.f32 %v1424_v42, %v1172_v41 }
 0xe52   :  { %v1715_v43 = vpop.eup %1714 }
 0xe53   :  { %v1173_v45 = vmul.f32 %v1715_v43, %v1157_v24  ;;  %v1190_v48 = vadd.f32 %v1425_v46, %v1181_v44 }
 0xe55   :  { %v1182_v47 = vmul.f32 %v1424_v42, %v1173_v45 }
 0xe57   :  { %v1191_v49 = vadd.f32 %v1425_v46, %v1182_v47 }
 0xe59   :  { %v1192_v50 = vpack.c.bf16 %v1191_v49, %v1190_v48 }
 0xe5b   :  { %1606 = vmatmul.mubr.msk.bf16.vlgmr.msra.gmra.mrb[40].mxu0 %vm47_vm0, %v1192_v50 }
 0xf2e   :  { %v1253_v54 = vpop.f32.mrb[40].mxu0 }
 0xf2f   :  { %v1254_v55 = vadd.f32 %v1426_v53, %v1253_v54  ;;  %v1607_v56 = vpop.f32.mrb[41].mxu0 }
 0xf30   :  { %v1256_v57 = vpop.f32.mrb[42].mxu0 }
 0xf31   :  { %v1257_v58 = vadd.f32 %v1426_v53, %v1256_v57  ;;  %v1608_v59 = vpop.f32.mrb[43].mxu0  ;;  %v1260_v60 = vmax.f32 %v1254_v55, 0.0 }
 0xf33   :  { %v1261_v61 = vmax.f32 %v1257_v58, 0.0 }
 0xf35   :  { %v1262_v62 = vpack.c.bf16 %v1261_v61, %v1260_v60 }
 0xf37   :  { %1626 = vmatmul.mubr.bf16.vlgmr.msra.gmra.mrb[32].mxu1 %v1262_v62 }
 0xf38   :  { %1727 = shalt.err (!%p1724_p4)
}
 0xf39   :  { %s1728_s9 = scalar_lea.hbm %s2128_s13, 256 }
 0xf3a   :  { %p1729_p5 = scmp.ne.s32.totalorder %s2128_s13, %s1728_s9  ;;  %p1732_p6 = scmp.lt.u32.totalorder %s1728_s9, %s2128_s13 }
 0xf3c   :  { %p1734_p7 = pnand %p1732_p6, %p1729_p5 }
 0xf3e   :  { %1737 = shalt.err (!%p1734_p7)
}
 0xf3f   :  { %s1757_s22 = smov 128   ;;  %v1430_v15 = vld [vmem:[%s2122_s7] ss:$0 sm:$0xff] }
 0xf40   :  { %1392 = dma.vmem_to_hbm [thread:$0]  %s1387_s17, 256, %s2128_s13, [#allocation3], %s1757_s22, %s1757_s22, %s1753_s27  }
0x100a   :  { %v1368_v63 = vpop.f32.mrb[32].mxu1 }
0x100b   :  { %v1369_v2 = vadd.f32 %v1430_v15, %v1368_v63  ;;  %v1627_v3 = vpop.f32.mrb[33].mxu1 }
0x100c   :  { %v1371_v4 = vpop.f32.mrb[34].mxu1 }
0x100d   :  { %v1375_v5 = vadd.f32 %v1369_v2, %v2028_v10  ;;  %v1372_v6 = vadd.f32 %v1430_v15, %v1371_v4  ;;  %v1628_v25 = vpop.f32.mrb[35].mxu1 }
0x100f   :  { %1377 = vst.msk [vmem:[%s2127_s12] sm:$0xff] %vm47_vm0, %v1375_v5  ;;  %v1376_v8 = vadd.f32 %v1372_v6, %v2031_v16 }
0x1011   :  { %1378 = vst.msk [vmem:[%s2127_s12 + $0x8] sm:$0xff] %vm47_vm0, %v1376_v8 }
0x1012   :  { %1738 = dma.done.wait [#allocation3], 256  }
0x1013   :  { %1739 = vsyncadd [#allocation3], 4294967040 }
0x1014   :  { %1398 = vsyncpa [#allocation3], 1 }

// kernel: transformer_encoder_forward.3
= control target key start
LH: loop header
LB: loop body
LE: loop exit
PB: predicated region body
PF: predicated region fallthrough
CT: control target
= control target key end

     0   :  { %19 = vsyncpa [#allocation3], 0  ;;  %vm48_vm0 = vcmask 261120   ;;  %s2183_s0 = inlined_call_operand.vmem [shape: f32[16,32], index: 0, kind: input, shape index: {}]   ;;  %s2184_s1 = inlined_call_operand.vmem [shape: bf16[32,96], index: 1, kind: input, shape index: {}]   ;;  %s2185_s2 = inlined_call_operand.vmem [shape: bf16[32,32], index: 2, kind: input, shape index: {}]   ;;  %s2186_s3 = inlined_call_operand.vmem [shape: f32[1,32], index: 3, kind: input, shape index: {}]   ;;  %s2187_s4 = inlined_call_operand.vmem [shape: bf16[32,128], index: 4, kind: input, shape index: {}]   ;;  %s2188_s5 = inlined_call_operand.vmem [shape: f32[1,128], index: 5, kind: input, shape index: {}]   ;;  %s2189_s6 = inlined_call_operand.vmem [shape: bf16[128,32], index: 6, kind: input, shape index: {}]   ;;  %s2190_s7 = inlined_call_operand.vmem [shape: f32[1,32], index: 7, kind: input, shape index: {}]   ;;  %s2191_s8 = inlined_call_operand.vmem [shape: f32[1,32], index: 8, kind: input, shape index: {}]   ;;  %s2192_s9 = inlined_call_operand.vmem [shape: f32[1,32], index: 9, kind: input, shape index: {}]   ;;  %s2193_s10 = inlined_call_operand.vmem [shape: f32[1,32], index: 10, kind: input, shape index: {}]   ;;  %s2194_s11 = inlined_call_operand.vmem [shape: f32[1,32], index: 11, kind: input, shape index: {}]   ;;  %s2195_s12 = inlined_call_operand.hbm [shape: f32[2,1,32], index: 12, kind: output, shape index: {0}]   ;;  %s2196_s13 = inlined_call_operand.hbm [shape: f32[2,8,8], index: 13, kind: output, shape index: {1}]  }
   0x1   :  { %v1890_v0 = vld [vmem:[%s2183_s0] sm:$0xff]  ;;  %v1895_v1 = vld [vmem:[%s2183_s0 + $0x8] sm:$0xff] }
   0x2   :  { %v49_v2 = vsel %vm48_vm0, %v1890_v0, 0.0  ;;  %v52_v3 = vsel %vm48_vm0, %v1895_v1, 0.0 }
   0x3   :  { %50 = vadd.xlane.f32.xlu0 %v49_v2 }
   0x7   :  { %53 = vadd.xlane.f32.xlu0 %v52_v3 }
   0x8   :  { %20 = vsyncpa [#allocation5], 0  ;;  %v1695_v14 = vld [vmem:[%s2184_s1] sm:$0xff]   ;;  %v1797_v15 = vmov 0.0   ;;  %v1696_v16 = vld [vmem:[%s2184_s1 + $0x8] sm:$0xff]   ;;  %vm1798_vm1 = vmmov 0  }
   0x9   :  { %1520 = vmatprep.subr.bf16.mxu0 %v1797_v15  ;;  %1540 = vmatprep.subr.bf16.mxu1 %v1797_v15  ;;  %v1430_v25 = vld [vmem:[%s2191_s8] ss:$0 sm:$0xff]  ;;  %s1799_s8 = smov 96   ;;  %vm160_vm2 = vcmask 64512   ;;  %s1801_s18 = smov 88   ;;  %vm289_vm3 = vcmask 1043456  }
   0xa   :  { %1521 = vmatpush3.bf16.msra.mxu0 %v1695_v14  ;;  %1524 = vmatprep.mubr.msk.bf16.mxu0 %vm1798_vm1, %v1797_v15  ;;  %v1431_v29 = vld [vmem:[%s2192_s9] ss:$0 sm:$0xff]  ;;  %s1800_s9 = smov 64   ;;  %s1802_s19 = smov 120   ;;  %vm1073_vm4 = vcmask 130048   ;;  %vm1076_vm5 = vcmask 195584  }
   0xb   :  { %1522 = vmatprep.subr.bf16.mxu0 %v1797_v15  ;;  %1542 = vmatprep.mubr.msk.bf16.mxu1 %vm1798_vm1, %v1797_v15  ;;  %s1803_s20 = smov 56   ;;  %s1804_s21 = smov 80  }
   0xc   :  { %s1805_s22 = smov 112   ;;  %s1806_s23 = smov 48  }
   0xd   :  { %s1807_s24 = smov 72   ;;  %s1808_s25 = smov 104  }
   0xe   :  { %1523 = vmatpush3.bf16.msra.mxu0 %v1696_v16  ;;  %s1809_s26 = smov 40   ;;  %s1810_s27 = smov 8  }
   0xf   :  { %1528 = vmatprep.subr.bf16.mxu0 %v1797_v15  ;;  %s1811_s28 = smov 16   ;;  %s1812_s1 = smov 24  }
  0x10   :  { %s1813_s17 = smov [#allocation4]  }
  0x90   :  { %v51_v4 = vpop.xlane.xlu0 %50 }
  0x91   :  { %v56_v5 = vmul.f32 0.03125, %v51_v4 }
  0x93   :  { %v58_v6 = vsub.f32 %v1890_v0, %v56_v5 }
  0x94   :  { %v54_v7 = vpop.xlane.xlu0 %53 }
  0x95   :  { %v57_v8 = vmul.f32 0.03125, %v54_v7  ;;  %v60_v9 = vmul.f32 %v58_v6, %v58_v6 }
  0x97   :  { %v59_v10 = vsub.f32 %v1895_v1, %v57_v8  ;;  %v62_v11 = vsel %vm48_vm0, %v60_v9, 0.0 }
  0x98   :  { %63 = vadd.xlane.f32.xlu1 %v62_v11 }
  0x99   :  { %v61_v12 = vmul.f32 %v59_v10, %v59_v10 }
  0x9b   :  { %v65_v13 = vsel %vm48_vm0, %v61_v12, 0.0 }
  0x9c   :  { %66 = vadd.xlane.f32.xlu1 %v65_v13 }
 0x125   :  { %v64_v17 = vpop.xlane.xlu1 %63 }
 0x126   :  { %v68_v18 = vmul.f32 0.03125, %v64_v17 }
 0x128   :  { %v70_v19 = vadd.f32 1e-05, %v68_v18 }
 0x129   :  { %v67_v20 = vpop.xlane.xlu1 %66 }
 0x12a   :  { %1709 = vrsqrt.f32 %v70_v19  ;;  %v69_v21 = vmul.f32 0.03125, %v67_v20 }
 0x12c   :  { %v71_v22 = vadd.f32 1e-05, %v69_v21 }
 0x12e   :  { %1711 = vrsqrt.f32 %v71_v22 }
 0x134   :  { %v1710_v23 = vpop.eup %1709 }
 0x135   :  { %v74_v24 = vmul.f32 %v1710_v23, %v58_v6 }
 0x137   :  { %v83_v28 = vmul.f32 %v1430_v25, %v74_v24 }
 0x138   :  { %v1712_v26 = vpop.eup %1711 }
 0x139   :  { %v75_v27 = vmul.f32 %v1712_v26, %v59_v10  ;;  %v92_v31 = vadd.f32 %v1431_v29, %v83_v28 }
 0x13b   :  { %v84_v30 = vmul.f32 %v1430_v25, %v75_v27 }
 0x13d   :  { %v93_v32 = vadd.f32 %v1431_v29, %v84_v30 }
 0x13f   :  { %v94_v33 = vpack.c.bf16 %v93_v32, %v92_v31 }
 0x141   :  { %1525 = vmatmul.mubr.msk.bf16.vlgmr.msra.gmra.mrb[0].mxu0 %vm48_vm0, %v94_v33 }
 0x142   :  { %1530 = vmatprep.mubr.msk.bf16.mxu0 %vm1798_vm1, %v1797_v15 }
 0x214   :  { %v148_v34 = vpop.f32.mrb[0].mxu0 }
 0x215   :  { %v1928_v35 = vpack.c.bf16 %v148_v34, %v148_v34  ;;  %v1526_v36 = vpop.f32.mrb[1].mxu0 }
 0x216   :  { %v151_v37 = vpop.f32.mrb[2].mxu0 }
 0x217   :  { %v1930_v38 = vpack.c.bf16 %v151_v37, %v151_v37  ;;  %158 = vrot.lane.b32.xlu0 %v1928_v35, %s1799_s8  ;;  %v1527_v39 = vpop.f32.mrb[3].mxu0 }
 0x219   :  { %208 = vrot.lane.b32.xlu1 %v1930_v38, %s1799_s8  ;;  %s1415_s8 = sshll.u32 %s1813_s17, 4  ;;  %s1416_s8 = int_to_ptr.vmem [resolvable:$true] %s1415_s8 }
 0x21a   :  { %p1754_p1 = scmp.lt.s32.totalorder %s1416_s8, %s1416_s8 }
 0x289   :  { %v159_v40 = vpop.permute.xlu0 %158 }
 0x28a   :  { %v165_v41 = vsel %vm160_vm2, %v159_v40, 0 }
 0x28b   :  { %1529 = vmatpush3.bf16.xpose.msra.mxu0 %v165_v41  ;;  %v209_v42 = vpop.permute.xlu1 %208 }
 0x28c   :  { %1534 = vmatprep.subr.bf16.mxu0 %v1797_v15  ;;  %v214_v43 = vsel %vm160_vm2, %v209_v42, 0 }
 0x292   :  { %1531 = vmatmul.mubr.msk.bf16.vlgmr.msra.gmra.mrb[4].mxu0 %vm160_vm2, %v1928_v35 }
 0x293   :  { %1535 = vmatpush3.bf16.xpose.msra.mxu0 %v214_v43  ;;  %1536 = vmatprep.mubr.msk.bf16.mxu0 %vm1798_vm1, %v1797_v15 }
 0x294   :  { %1546 = vmatprep.subr.bf16.mxu0 %v1797_v15 }
 0x29a   :  { %1537 = vmatmul.mubr.msk.bf16.vlgmr.msra.gmra.mrb[8].mxu0 %vm160_vm2, %v1930_v38 }
 0x29b   :  { %1548 = vmatprep.mubr.msk.bf16.mxu0 %vm1798_vm1, %v1797_v15 }
 0x365   :  { %v201_v44 = vpop.f32.mrb[4].mxu0 }
 0x366   :  { %v1532_v45 = vpop.f32.mrb[5].mxu0  ;;  %v256_v46 = vsel %vm160_vm2, %v201_v44, -inf }
 0x367   :  { %257 = vmax.xlane.f32.xlu1 %v256_v46  ;;  %v204_v47 = vpop.f32.mrb[6].mxu0 }
 0x368   :  { %v1533_v48 = vpop.f32.mrb[7].mxu0 }
 0x36d   :  { %v250_v49 = vpop.f32.mrb[8].mxu0 }
 0x36e   :  { %v1538_v50 = vpop.f32.mrb[9].mxu0  ;;  %v259_v51 = vsel %vm160_vm2, %v250_v49, -inf }
 0x36f   :  { %260 = vmax.xlane.f32.xlu0 %v259_v51  ;;  %v253_v52 = vpop.f32.mrb[10].mxu0 }
 0x370   :  { %v1539_v53 = vpop.f32.mrb[11].mxu0 }
 0x378   :  { %333 = vrot.lane.b32.xlu1 %v1930_v38, %s1800_s9 }
 0x37c   :  { %383 = vrot.lane.b32.xlu1 %v1928_v35, %s1801_s18 }
 0x3f4   :  { %v258_v54 = vpop.xlane.xlu1 %257 }
 0x3f5   :  { %v262_v55 = vsub.f32 %v201_v44, %v258_v54 }
 0x3f7   :  { %v264_v56 = vmul.f32 1.442695, %v262_v55 }
 0x3f8   :  { %v334_v57 = vpop.permute.xlu1 %333 }
 0x3f9   :  { %1713 = vpow2.f32 %v264_v56  ;;  %v339_v58 = vsel %vm289_vm3, %v334_v57, 0 }
 0x3fa   :  { %1547 = vmatpush3.bf16.msra.mxu0 %v339_v58 }
 0x3fb   :  { %1558 = vmatprep.subr.bf16.mxu0 %v1797_v15 }
 0x3fc   :  { %v261_v59 = vpop.xlane.xlu0 %260  ;;  %v384_v5 = vpop.permute.xlu1 %383 }
 0x3fd   :  { %v263_v60 = vsub.f32 %v250_v49, %v261_v59  ;;  %v389_v12 = vsel %vm160_vm2, %v384_v5, 0 }
 0x3ff   :  { %v266_v61 = vmul.f32 1.442695, %v263_v60 }
 0x401   :  { %1715 = vpow2.f32 %v266_v61 }
 0x403   :  { %v1714_v62 = vpop.eup %1713 }
 0x404   :  { %v268_v63 = vsel %vm160_vm2, %v1714_v62, 0.0 }
 0x405   :  { %269 = vadd.xlane.f32.xlu0 %v268_v63 }
 0x40b   :  { %v1716_v2 = vpop.eup %1715 }
 0x40c   :  { %v271_v3 = vsel %vm160_vm2, %v1716_v2, 0.0 }
 0x40d   :  { %272 = vadd.xlane.f32.xlu1 %v271_v3 }
 0x41b   :  { %284 = vrot.lane.b32.xlu0 %v1928_v35, %s1800_s9  ;;  %s1749_s9 = scalar_lea.vmem %s1416_s8, 256 }
 0x41c   :  { %p1750_p0 = scmp.ne.s32.totalorder %s1416_s8, %s1749_s9  ;;  %p1755_p2 = scmp.lt.s32.totalorder %s1749_s9, %s1749_s9 }
 0x41e   :  { %433 = vrot.lane.b32.xlu1 %v1930_v38, %s1801_s18  ;;  %p1756_p3 = por %p1755_p2, %p1754_p1 }
 0x41f   :  { %381 = vrot.lane.b32.xlu0 %v1928_v35, %s1802_s19 }
 0x420   :  { %p1757_p4 = pnand %p1756_p3, %p1750_p0 }
 0x422   :  { %431 = vrot.lane.b32.xlu1 %v1930_v38, %s1802_s19 }
 0x492   :  { %v270_v4 = vpop.xlane.xlu0 %269 }
 0x493   :  { %1717 = vrcp.f32 %v270_v4 }
 0x496   :  { %v285_v6 = vpop.permute.xlu0 %284 }
 0x497   :  { %v291_v7 = vsel %vm289_vm3, %v285_v6, 0 }
 0x498   :  { %1541 = vmatpush3.bf16.msra.mxu1 %v291_v7 }
 0x499   :  { %1552 = vmatprep.subr.bf16.mxu1 %v1797_v15 }
 0x49a   :  { %v273_v8 = vpop.xlane.xlu1 %272  ;;  %v382_v18 = vpop.permute.xlu0 %381 }
 0x49b   :  { %1719 = vrcp.f32 %v273_v8 }
 0x49d   :  { %v1718_v9 = vpop.eup %1717 }
 0x49e   :  { %v278_v10 = vmul.f32 %v1718_v9, %v1714_v62  ;;  %v434_v16 = vpop.permute.xlu1 %433 }
 0x49f   :  { %v439_v19 = vsel %vm160_vm2, %v434_v16, 0 }
 0x4a0   :  { %v282_v11 = vpack.c.bf16 %v278_v10, %v278_v10  ;;  %280 = vst.msk [vmem:[#allocation4] sm:$0xff] %vm160_vm2, %v278_v10 }
 0x4a2   :  { %1543 = vmatmul.mubr.msk.bf16.vlgmr.msra.gmra.mrb[0].mxu1 %vm160_vm2, %v282_v11  ;;  %v432_v20 = vpop.permute.xlu1 %431 }
 0x4a3   :  { %1553 = vmatpush3.bf16.xpose.msra.mxu1 %v389_v12  ;;  %1554 = vmatprep.mubr.msk.bf16.mxu1 %vm1798_vm1, %v1797_v15 }
 0x4a4   :  { %1564 = vmatprep.subr.bf16.mxu1 %v1797_v15 }
 0x4a5   :  { %v1720_v13 = vpop.eup %1719 }
 0x4a6   :  { %v279_v14 = vmul.f32 %v1720_v13, %v1716_v2 }
 0x4a8   :  { %281 = vst.msk [vmem:[#allocation4 + $0x8] sm:$0xff] %vm160_vm2, %v279_v14  ;;  %v283_v17 = vpack.c.bf16 %v279_v14, %v279_v14 }
 0x4aa   :  { %1549 = vmatmul.mubr.msk.bf16.vlgmr.msra.gmra.mrb[12].mxu0 %vm160_vm2, %v283_v17  ;;  %1555 = vmatmul.mubr.msk.bf16.vlgmr.msra.gmra.mrb[4].mxu1 %vm160_vm2, %v382_v18 }
 0x4ab   :  { %1559 = vmatpush3.bf16.xpose.msra.mxu0 %v439_v19  ;;  %1560 = vmatprep.mubr.msk.bf16.mxu0 %vm1798_vm1, %v1797_v15 }
 0x4ac   :  { %1570 = vmatprep.subr.bf16.mxu0 %v1797_v15  ;;  %1566 = vmatprep.mubr.msk.bf16.mxu1 %vm1798_vm1, %v1797_v15 }
 0x4b2   :  { %1561 = vmatmul.mubr.msk.bf16.vlgmr.msra.gmra.mrb[16].mxu0 %vm160_vm2, %v432_v20 }
 0x4b3   :  { %1572 = vmatprep.mubr.msk.bf16.mxu0 %vm1798_vm1, %v1797_v15 }
 0x575   :  { %v1978_v21 = vpop.f32.mrb[0].mxu1 }
 0x576   :  { %v1544_v22 = vpop.f32.mrb[1].mxu1 }
 0x577   :  { %v330_v23 = vpop.f32.mrb[2].mxu1 }
 0x578   :  { %v1545_v24 = vpop.f32.mrb[3].mxu1 }
 0x57d   :  { %v1980_v25 = vpop.f32.mrb[12].mxu0  ;;  %v425_v26 = vpop.f32.mrb[4].mxu1 }
 0x57e   :  { %v1550_v27 = vpop.f32.mrb[13].mxu0  ;;  %v1556_v28 = vpop.f32.mrb[5].mxu1  ;;  %v481_v29 = vsel %vm160_vm2, %v425_v26, -inf }
 0x57f   :  { %482 = vmax.xlane.f32.xlu0 %v481_v29  ;;  %v378_v30 = vpop.f32.mrb[14].mxu0  ;;  %v428_v31 = vpop.f32.mrb[6].mxu1 }
 0x580   :  { %v1551_v32 = vpop.f32.mrb[15].mxu0  ;;  %v1557_v33 = vpop.f32.mrb[7].mxu1 }
 0x585   :  { %v475_v34 = vpop.f32.mrb[16].mxu0 }
 0x586   :  { %v1562_v36 = vpop.f32.mrb[17].mxu0  ;;  %v484_v37 = vsel %vm160_vm2, %v475_v34, -inf }
 0x587   :  { %485 = vmax.xlane.f32.xlu1 %v484_v37  ;;  %v478_v39 = vpop.f32.mrb[18].mxu0 }
 0x588   :  { %v1563_v40 = vpop.f32.mrb[19].mxu0 }
 0x598   :  { %555 = vrot.lane.b32.xlu1 %v1930_v38, %s1803_s20 }
 0x59c   :  { %605 = vrot.lane.b32.xlu1 %v1928_v35, %s1804_s21 }
 0x5a0   :  { %655 = vrot.lane.b32.xlu1 %v1930_v38, %s1804_s21 }
 0x5a4   :  { %653 = vrot.lane.b32.xlu1 %v1930_v38, %s1805_s22 }
 0x60c   :  { %v483_v41 = vpop.xlane.xlu0 %482 }
 0x60d   :  { %v487_v42 = vsub.f32 %v425_v26, %v483_v41 }
 0x60f   :  { %v489_v43 = vmul.f32 1.442695, %v487_v42 }
 0x611   :  { %1721 = vpow2.f32 %v489_v43 }
 0x614   :  { %v486_v44 = vpop.xlane.xlu1 %485 }
 0x615   :  { %v488_v45 = vsub.f32 %v475_v34, %v486_v44 }
 0x617   :  { %v491_v46 = vmul.f32 1.442695, %v488_v45 }
 0x618   :  { %v556_v47 = vpop.permute.xlu1 %555 }
 0x619   :  { %1723 = vpow2.f32 %v491_v46  ;;  %v561_v48 = vsel %vm289_vm3, %v556_v47, 0 }
 0x61a   :  { %1571 = vmatpush3.bf16.msra.mxu0 %v561_v48 }
 0x61b   :  { %v1722_v49 = vpop.eup %1721  ;;  %1582 = vmatprep.subr.bf16.mxu0 %v1797_v15 }
 0x61c   :  { %v493_v50 = vsel %vm160_vm2, %v1722_v49, 0.0  ;;  %v606_v60 = vpop.permute.xlu1 %605 }
 0x61d   :  { %494 = vadd.xlane.f32.xlu0 %v493_v50  ;;  %v611_v2 = vsel %vm160_vm2, %v606_v60, 0 }
 0x620   :  { %v656_v63 = vpop.permute.xlu1 %655 }
 0x621   :  { %v661_v4 = vsel %vm160_vm2, %v656_v63, 0 }
 0x623   :  { %v1724_v51 = vpop.eup %1723 }
 0x624   :  { %v496_v52 = vsel %vm160_vm2, %v1724_v51, 0.0  ;;  %v654_v6 = vpop.permute.xlu1 %653 }
 0x625   :  { %497 = vadd.xlane.f32.xlu0 %v496_v52 }
 0x63b   :  { %507 = vrot.lane.b32.xlu0 %v1928_v35, %s1803_s20 }
 0x63f   :  { %603 = vrot.lane.b32.xlu0 %v1928_v35, %s1805_s22 }
 0x6aa   :  { %v495_v53 = vpop.xlane.xlu0 %494 }
 0x6ab   :  { %1725 = vrcp.f32 %v495_v53 }
 0x6b2   :  { %v498_v54 = vpop.xlane.xlu0 %497 }
 0x6b3   :  { %1727 = vrcp.f32 %v498_v54 }
 0x6b5   :  { %v1726_v55 = vpop.eup %1725 }
 0x6b6   :  { %v503_v56 = vmul.f32 %v1726_v55, %v1722_v49  ;;  %v508_v57 = vpop.permute.xlu0 %507 }
 0x6b7   :  { %v513_v58 = vsel %vm289_vm3, %v508_v57, 0 }
 0x6b8   :  { %1565 = vmatpush3.bf16.msra.mxu1 %v513_v58  ;;  %v505_v59 = vpack.c.bf16 %v503_v56, %v503_v56 }
 0x6b9   :  { %1576 = vmatprep.subr.bf16.mxu1 %v1797_v15 }
 0x6ba   :  { %v604_v5 = vpop.permute.xlu0 %603 }
 0x6bb   :  { %1567 = vmatmul.mubr.msk.bf16.vlgmr.msra.gmra.mrb[8].mxu1 %vm160_vm2, %v505_v59 }
 0x6bc   :  { %1578 = vmatprep.mubr.msk.bf16.mxu1 %vm1798_vm1, %v1797_v15 }
 0x6bd   :  { %v1728_v61 = vpop.eup %1727 }
 0x6be   :  { %v504_v62 = vmul.f32 %v1728_v61, %v1724_v51 }
 0x6c0   :  { %v506_v3 = vpack.c.bf16 %v504_v62, %v504_v62 }
 0x6c1   :  { %1577 = vmatpush3.bf16.xpose.msra.mxu1 %v611_v2 }
 0x6c2   :  { %1573 = vmatmul.mubr.msk.bf16.vlgmr.msra.gmra.mrb[20].mxu0 %vm160_vm2, %v506_v3  ;;  %1588 = vmatprep.subr.bf16.mxu1 %v1797_v15 }
 0x6c3   :  { %1583 = vmatpush3.bf16.xpose.msra.mxu0 %v661_v4  ;;  %1584 = vmatprep.mubr.msk.bf16.mxu0 %vm1798_vm1, %v1797_v15 }
 0x6c4   :  { %1594 = vmatprep.subr.bf16.mxu0 %v1797_v15 }
 0x6c8   :  { %1579 = vmatmul.mubr.msk.bf16.vlgmr.msra.gmra.mrb[12].mxu1 %vm160_vm2, %v604_v5 }
 0x6c9   :  { %1590 = vmatprep.mubr.msk.bf16.mxu1 %vm1798_vm1, %v1797_v15 }
 0x6ca   :  { %1585 = vmatmul.mubr.msk.bf16.vlgmr.msra.gmra.mrb[24].mxu0 %vm160_vm2, %v654_v6 }
 0x6cb   :  { %1596 = vmatprep.mubr.msk.bf16.mxu0 %vm1798_vm1, %v1797_v15 }
 0x78e   :  { %v2012_v7 = vpop.f32.mrb[8].mxu1 }
 0x78f   :  { %v1568_v8 = vpop.f32.mrb[9].mxu1 }
 0x790   :  { %v552_v9 = vpop.f32.mrb[10].mxu1 }
 0x791   :  { %v1569_v10 = vpop.f32.mrb[11].mxu1 }
 0x795   :  { %v2014_v11 = vpop.f32.mrb[20].mxu0 }
 0x796   :  { %v1680_v12 = vpack.i.bf16 %v2014_v11, %v2012_v7  ;;  %v1574_v13 = vpop.f32.mrb[21].mxu0 }
 0x797   :  { %v600_v14 = vpop.f32.mrb[22].mxu0 }
 0x798   :  { %v1575_v16 = vpop.f32.mrb[23].mxu0 }
 0x79b   :  { %v647_v17 = vpop.f32.mrb[12].mxu1 }
 0x79c   :  { %v1580_v18 = vpop.f32.mrb[13].mxu1  ;;  %v703_v19 = vsel %vm160_vm2, %v647_v17, -inf }
 0x79d   :  { %704 = vmax.xlane.f32.xlu0 %v703_v19  ;;  %v650_v20 = vpop.f32.mrb[14].mxu1  ;;  %v697_v22 = vpop.f32.mrb[24].mxu0 }
 0x79e   :  { %v1581_v23 = vpop.f32.mrb[15].mxu1  ;;  %v1586_v24 = vpop.f32.mrb[25].mxu0  ;;  %v706_v26 = vsel %vm160_vm2, %v697_v22, -inf }
 0x79f   :  { %707 = vmax.xlane.f32.xlu1 %v706_v26  ;;  %v700_v27 = vpop.f32.mrb[26].mxu0 }
 0x7a0   :  { %v1587_v28 = vpop.f32.mrb[27].mxu0 }
 0x7b0   :  { %777 = vrot.lane.b32.xlu1 %v1930_v38, %s1806_s23 }
 0x7b4   :  { %827 = vrot.lane.b32.xlu1 %v1928_v35, %s1807_s24 }
 0x7b8   :  { %877 = vrot.lane.b32.xlu1 %v1930_v38, %s1807_s24 }
 0x7bc   :  { %875 = vrot.lane.b32.xlu1 %v1930_v38, %s1808_s25 }
 0x82a   :  { %v705_v29 = vpop.xlane.xlu0 %704 }
 0x82b   :  { %v709_v30 = vsub.f32 %v647_v17, %v705_v29 }
 0x82c   :  { %v708_v31 = vpop.xlane.xlu1 %707 }
 0x82d   :  { %v711_v32 = vmul.f32 1.442695, %v709_v30  ;;  %v710_v33 = vsub.f32 %v697_v22, %v708_v31 }
 0x82f   :  { %1729 = vpow2.f32 %v711_v32  ;;  %v713_v34 = vmul.f32 1.442695, %v710_v33 }
 0x830   :  { %v778_v36 = vpop.permute.xlu1 %777 }
 0x831   :  { %1731 = vpow2.f32 %v713_v34  ;;  %v783_v37 = vsel %vm289_vm3, %v778_v36, 0 }
 0x832   :  { %1595 = vmatpush3.bf16.msra.mxu0 %v783_v37 }
 0x833   :  { %1606 = vmatprep.subr.bf16.mxu0 %v1797_v15 }
 0x834   :  { %v828_v48 = vpop.permute.xlu1 %827 }
 0x835   :  { %v833_v54 = vsel %vm160_vm2, %v828_v48, 0 }
 0x838   :  { %v878_v53 = vpop.permute.xlu1 %877 }
 0x839   :  { %v1730_v39 = vpop.eup %1729  ;;  %v883_v56 = vsel %vm160_vm2, %v878_v53, 0 }
 0x83a   :  { %v715_v40 = vsel %vm160_vm2, %v1730_v39, 0.0 }
 0x83b   :  { %v1732_v41 = vpop.eup %1731  ;;  %716 = vadd.xlane.f32.xlu0 %v715_v40 }
 0x83c   :  { %v718_v42 = vsel %vm160_vm2, %v1732_v41, 0.0  ;;  %v876_v58 = vpop.permute.xlu1 %875 }
 0x83f   :  { %719 = vadd.xlane.f32.xlu0 %v718_v42  ;;  %v1698_v42 = vld [vmem:[%s2185_s2 + $0x8] sm:$0xff]  }
 0x855   :  { %729 = vrot.lane.b32.xlu0 %v1928_v35, %s1806_s23 }
 0x859   :  { %825 = vrot.lane.b32.xlu0 %v1928_v35, %s1808_s25 }
 0x8c8   :  { %v717_v43 = vpop.xlane.xlu0 %716 }
 0x8c9   :  { %1733 = vrcp.f32 %v717_v43 }
 0x8cc   :  { %v720_v44 = vpop.xlane.xlu0 %719 }
 0x8cd   :  { %1735 = vrcp.f32 %v720_v44 }
 0x8d0   :  { %v730_v45 = vpop.permute.xlu0 %729 }
 0x8d1   :  { %v735_v46 = vsel %vm289_vm3, %v730_v45, 0 }
 0x8d2   :  { %1589 = vmatpush3.bf16.msra.mxu1 %v735_v46 }
 0x8d3   :  { %v1734_v47 = vpop.eup %1733  ;;  %1600 = vmatprep.subr.bf16.mxu1 %v1797_v15 }
 0x8d4   :  { %v725_v49 = vmul.f32 %v1734_v47, %v1730_v39  ;;  %v826_v57 = vpop.permute.xlu0 %825 }
 0x8d6   :  { %v727_v50 = vpack.c.bf16 %v725_v49, %v725_v49 }
 0x8d7   :  { %v1736_v51 = vpop.eup %1735 }
 0x8d8   :  { %v726_v52 = vmul.f32 %v1736_v51, %v1732_v41  ;;  %1591 = vmatmul.mubr.msk.bf16.vlgmr.msra.gmra.mrb[16].mxu1 %vm160_vm2, %v727_v50  ;;  %v1697_v41 = vld [vmem:[%s2185_s2] sm:$0xff]  }
 0x8d9   :  { %1602 = vmatprep.mubr.msk.bf16.mxu1 %vm1798_vm1, %v1797_v15 }
 0x8da   :  { %v728_v55 = vpack.c.bf16 %v726_v52, %v726_v52 }
 0x8db   :  { %1601 = vmatpush3.bf16.xpose.msra.mxu1 %v833_v54 }
 0x8dc   :  { %1597 = vmatmul.mubr.msk.bf16.vlgmr.msra.gmra.mrb[28].mxu0 %vm160_vm2, %v728_v55  ;;  %1612 = vmatprep.subr.bf16.mxu1 %v1797_v15 }
 0x8dd   :  { %1607 = vmatpush3.bf16.xpose.msra.mxu0 %v883_v56  ;;  %1608 = vmatprep.mubr.msk.bf16.mxu0 %vm1798_vm1, %v1797_v15 }
 0x8de   :  { %1618 = vmatprep.subr.bf16.mxu0 %v1797_v15 }
 0x8e2   :  { %1603 = vmatmul.mubr.msk.bf16.vlgmr.msra.gmra.mrb[20].mxu1 %vm160_vm2, %v826_v57 }
 0x8e3   :  { %1614 = vmatprep.mubr.msk.bf16.mxu1 %vm1798_vm1, %v1797_v15 }
 0x8e4   :  { %1609 = vmatmul.mubr.msk.bf16.vlgmr.msra.gmra.mrb[32].mxu0 %vm160_vm2, %v876_v58 }
 0x8e5   :  { %1620 = vmatprep.mubr.msk.bf16.mxu0 %vm1798_vm1, %v1797_v15 }
 0x9ab   :  { %v771_v59 = vpop.f32.mrb[16].mxu1 }
 0x9ac   :  { %v1592_v60 = vpop.f32.mrb[17].mxu1 }
 0x9ad   :  { %v774_v61 = vpop.f32.mrb[18].mxu1 }
 0x9ae   :  { %v1593_v62 = vpop.f32.mrb[19].mxu1 }
 0x9af   :  { %v819_v63 = vpop.f32.mrb[28].mxu0 }
 0x9b0   :  { %v1685_v2 = vpack.i.bf16 %v819_v63, %v771_v59  ;;  %v1598_v3 = vpop.f32.mrb[29].mxu0 }
 0x9b1   :  { %v822_v4 = vpop.f32.mrb[30].mxu0 }
 0x9b2   :  { %v1599_v5 = vpop.f32.mrb[31].mxu0 }
 0x9b5   :  { %v869_v6 = vpop.f32.mrb[20].mxu1 }
 0x9b6   :  { %v1604_v8 = vpop.f32.mrb[21].mxu1  ;;  %v925_v9 = vsel %vm160_vm2, %v869_v6, -inf }
 0x9b7   :  { %926 = vmax.xlane.f32.xlu0 %v925_v9  ;;  %v872_v10 = vpop.f32.mrb[22].mxu1  ;;  %v919_v13 = vpop.f32.mrb[32].mxu0 }
 0x9b8   :  { %v1605_v14 = vpop.f32.mrb[23].mxu1  ;;  %v1610_v16 = vpop.f32.mrb[33].mxu0  ;;  %v928_v17 = vsel %vm160_vm2, %v919_v13, -inf }
 0x9b9   :  { %929 = vmax.xlane.f32.xlu1 %v928_v17  ;;  %v922_v18 = vpop.f32.mrb[34].mxu0 }
 0x9ba   :  { %v1611_v19 = vpop.f32.mrb[35].mxu0 }
 0x9ca   :  { %999 = vrot.lane.b32.xlu1 %v1930_v38, %s1809_s26 }
 0x9ce   :  { %1681 = vrot.lane.b32.xlu1 %v1680_v12, %s1810_s27 }
 0x9d2   :  { %1686 = vrot.lane.b32.xlu1 %v1685_v2, %s1811_s28 }
 0xa44   :  { %v927_v20 = vpop.xlane.xlu0 %926 }
 0xa45   :  { %v931_v22 = vsub.f32 %v869_v6, %v927_v20  ;;  %v1451_v6 = vld [vmem:[%s2186_s3] ss:$0 sm:$0xff] }
 0xa46   :  { %v930_v23 = vpop.xlane.xlu1 %929 }
 0xa47   :  { %v933_v24 = vmul.f32 1.442695, %v931_v22  ;;  %v932_v26 = vsub.f32 %v919_v13, %v930_v23 }
 0xa49   :  { %1737 = vpow2.f32 %v933_v24  ;;  %v935_v27 = vmul.f32 1.442695, %v932_v26 }
 0xa4a   :  { %v1000_v28 = vpop.permute.xlu1 %999 }
 0xa4b   :  { %1739 = vpow2.f32 %v935_v27  ;;  %v1005_v38 = vsel %vm289_vm3, %v1000_v28, 0 }
 0xa4c   :  { %1619 = vmatpush3.bf16.msra.mxu0 %v1005_v38  ;;  %v1699_v38 = vld [vmem:[%s2187_s4] sm:$0xff]  }
 0xa4d   :  { %1632 = vmatprep.subr.bf16.mxu0 %v1797_v15 }
 0xa4e   :  { %v1682_v52 = vpop.permute.xlu1 %1681 }
 0xa4f   :  { %v1684_v54 = vunpack.i.h.bf16 %v1682_v52  ;;  %v1683_v55 = vunpack.i.l.bf16 %v1682_v52  ;;  %v1708_v52 = vld [vmem:[%s2189_s6 + $0x38] sm:$0xff]  }
 0xa51   :  { %v1072_v59 = vsel %vm160_vm2, %v1980_v25, %v1684_v54  ;;  %v1071_v60 = vsel %vm160_vm2, %v1978_v21, %v1683_v55 }
 0xa52   :  { %v1687_v53 = vpop.permute.xlu1 %1686 }
 0xa53   :  { %v1738_v29 = vpop.eup %1737  ;;  %v1689_v56 = vunpack.i.h.bf16 %v1687_v53  ;;  %v1688_v57 = vunpack.i.l.bf16 %v1687_v53  ;;  %v1457_v53 = vld [vmem:[%s2188_s5] ss:$0 sm:$0xff] }
 0xa54   :  { %v937_v7 = vsel %vm160_vm2, %v1738_v29, 0.0 }
 0xa55   :  { %v1740_v11 = vpop.eup %1739  ;;  %938 = vadd.xlane.f32.xlu0 %v937_v7  ;;  %v1074_v63 = vsel %vm1073_vm4, %v1071_v60, %v1688_v57  ;;  %v1075_v2 = vsel %vm1073_vm4, %v1072_v59, %v1689_v56  ;;  %v1701_v7 = vld [vmem:[%s2189_s6] sm:$0xff]  }
 0xa56   :  { %v940_v12 = vsel %vm160_vm2, %v1740_v11, 0.0 }
 0xa59   :  { %941 = vadd.xlane.f32.xlu0 %v940_v12  ;;  %v1703_v12 = vld [vmem:[%s2189_s6 + $0x10] sm:$0xff]  }
 0xa6f   :  { %951 = vrot.lane.b32.xlu0 %v1928_v35, %s1809_s26 }
 0xae2   :  { %v939_v30 = vpop.xlane.xlu0 %938 }
 0xae3   :  { %1741 = vrcp.f32 %v939_v30  ;;  %v1704_v30 = vld [vmem:[%s2189_s6 + $0x18] sm:$0xff]  }
 0xae6   :  { %v942_v31 = vpop.xlane.xlu0 %941 }
 0xae7   :  { %1743 = vrcp.f32 %v942_v31  ;;  %v1705_v31 = vld [vmem:[%s2189_s6 + $0x20] sm:$0xff]  }
 0xaea   :  { %v952_v32 = vpop.permute.xlu0 %951 }
 0xaeb   :  { %v957_v33 = vsel %vm289_vm3, %v952_v32, 0  ;;  %v1706_v32 = vld [vmem:[%s2189_s6 + $0x28] sm:$0xff]  }
 0xaec   :  { %1613 = vmatpush3.bf16.msra.mxu1 %v957_v33 }
 0xaed   :  { %v1742_v34 = vpop.eup %1741  ;;  %1624 = vmatprep.subr.bf16.mxu1 %v1797_v15 }
 0xaee   :  { %v947_v36 = vmul.f32 %v1742_v34, %v1738_v29  ;;  %v1700_v29 = vld [vmem:[%s2187_s4 + $0x8] sm:$0xff]  }
 0xaf0   :  { %v949_v37 = vpack.c.bf16 %v947_v36, %v947_v36 }
 0xaf1   :  { %v1744_v39 = vpop.eup %1743 }
 0xaf2   :  { %v948_v40 = vmul.f32 %v1744_v39, %v1740_v11  ;;  %1615 = vmatmul.mubr.msk.bf16.vlgmr.msra.gmra.mrb[24].mxu1 %vm160_vm2, %v949_v37  ;;  %v1702_v11 = vld [vmem:[%s2189_s6 + $0x8] sm:$0xff]  }
 0xaf3   :  { %1628 = vmatprep.mubr.msk.bf16.mxu1 %vm1798_vm1, %v1797_v15  ;;  %1625 = vmatpush3.bf16.msra.mxu1 %v1697_v41 }
 0xaf4   :  { %v950_v35 = vpack.c.bf16 %v948_v40, %v948_v40  ;;  %1626 = vmatprep.subr.bf16.mxu1 %v1797_v15 }
 0xaf6   :  { %1621 = vmatmul.mubr.msk.bf16.vlgmr.msra.gmra.mrb[36].mxu0 %vm160_vm2, %v950_v35 }
 0xaf7   :  { %1636 = vmatprep.mubr.msk.bf16.mxu0 %vm1798_vm1, %v1797_v15  ;;  %1627 = vmatpush3.bf16.msra.mxu1 %v1698_v42  ;;  %v1455_v42 = vld [vmem:[%s2193_s10] ss:$0 sm:$0xff] }
 0xaf8   :  { %1640 = vmatprep.subr.bf16.mxu1 %v1797_v15  ;;  %1633 = vmatpush3.bf16.msra.mxu0 %v1699_v38 }
 0xaf9   :  { %1634 = vmatprep.subr.bf16.mxu0 %v1797_v15 }
 0xafc   :  { %1635 = vmatpush3.bf16.msra.mxu0 %v1700_v29 }
 0xbc5   :  { %v993_v43 = vpop.f32.mrb[24].mxu1 }
 0xbc6   :  { %v1616_v44 = vpop.f32.mrb[25].mxu1 }
 0xbc7   :  { %v996_v45 = vpop.f32.mrb[26].mxu1 }
 0xbc8   :  { %v1617_v46 = vpop.f32.mrb[27].mxu1 }
 0xbc9   :  { %v1041_v47 = vpop.f32.mrb[36].mxu0  ;;  %v1456_v46 = vld [vmem:[%s2194_s11] ss:$0 sm:$0xff] }
 0xbca   :  { %v1690_v48 = vpack.i.bf16 %v1041_v47, %v993_v43  ;;  %v1622_v49 = vpop.f32.mrb[37].mxu0 }
 0xbcb   :  { %v1044_v50 = vpop.f32.mrb[38].mxu0 }
 0xbcc   :  { %1691 = vrot.lane.b32.xlu0 %v1690_v48, %s1812_s1  ;;  %v1623_v51 = vpop.f32.mrb[39].mxu0 }
 0xbcd   :  { %v1707_v51 = vld [vmem:[%s2189_s6 + $0x30] sm:$0xff]  }
 0xc3e   :  { %v1692_v58 = vpop.permute.xlu0 %1691 }
 0xc3f   :  { %v1694_v61 = vunpack.i.h.bf16 %v1692_v58  ;;  %v1693_v62 = vunpack.i.l.bf16 %v1692_v58 }
 0xc41   :  { %v1078_v3 = vsel %vm1076_vm5, %v1075_v2, %v1694_v61  ;;  %v1077_v4 = vsel %vm1076_vm5, %v1074_v63, %v1693_v62 }
 0xc42   :  { %v1079_v5 = vpack.c.bf16 %v1078_v3, %v1077_v4 }
 0xc44   :  { %1629 = vmatmul.mubr.msk.bf16.vlgmr.msra.gmra.mrb[28].mxu1 %vm48_vm0, %v1079_v5 }
 0xc45   :  { %1656 = vmatprep.mubr.msk.bf16.mxu1 %vm1798_vm1, %v1797_v15  ;;  %1641 = vmatpush3.bf16.msra.mxu1 %v1701_v7 }
 0xc46   :  { %1642 = vmatprep.subr.bf16.mxu1 %v1797_v15 }
 0xc49   :  { %1643 = vmatpush3.bf16.msra.mxu1 %v1702_v11 }
 0xc4a   :  { %1644 = vmatprep.subr.bf16.mxu1 %v1797_v15 }
 0xc4d   :  { %1645 = vmatpush3.bf16.msra.mxu1 %v1703_v12 }
 0xc4e   :  { %1646 = vmatprep.subr.bf16.mxu1 %v1797_v15 }
 0xc51   :  { %1647 = vmatpush3.bf16.msra.mxu1 %v1704_v30 }
 0xc52   :  { %1648 = vmatprep.subr.bf16.mxu1 %v1797_v15 }
 0xc55   :  { %1649 = vmatpush3.bf16.msra.mxu1 %v1705_v31 }
 0xc56   :  { %1650 = vmatprep.subr.bf16.mxu1 %v1797_v15 }
 0xc59   :  { %1651 = vmatpush3.bf16.msra.mxu1 %v1706_v32 }
 0xc5a   :  { %1652 = vmatprep.subr.bf16.mxu1 %v1797_v15 }
 0xc5d   :  { %1653 = vmatpush3.bf16.msra.mxu1 %v1707_v51 }
 0xc5e   :  { %1654 = vmatprep.subr.bf16.mxu1 %v1797_v15 }
 0xc61   :  { %1655 = vmatpush3.bf16.msra.mxu1 %v1708_v52 }
 0xd17   :  { %v1140_v25 = vpop.f32.mrb[28].mxu1 }
 0xd18   :  { %v1141_v8 = vadd.f32 %v1451_v6, %v1140_v25  ;;  %v1630_v9 = vpop.f32.mrb[29].mxu1 }
 0xd19   :  { %v1143_v21 = vpop.f32.mrb[30].mxu1 }
 0xd1a   :  { %v2088_v10 = vadd.f32 %v1141_v8, %v1890_v0  ;;  %v1144_v13 = vadd.f32 %v1451_v6, %v1143_v21  ;;  %v1631_v14 = vpop.f32.mrb[31].mxu1 }
 0xd1c   :  { %v2091_v16 = vadd.f32 %v1144_v13, %v1895_v1  ;;  %v1149_v17 = vsel %vm48_vm0, %v2088_v10, 0.0 }
 0xd1d   :  { %1150 = vadd.xlane.f32.xlu1 %v1149_v17 }
 0xd1e   :  { %v1152_v18 = vsel %vm48_vm0, %v2091_v16, 0.0 }
 0xd1f   :  { %1153 = vadd.xlane.f32.xlu0 %v1152_v18 }
 0xdaa   :  { %v1151_v19 = vpop.xlane.xlu1 %1150 }
 0xdab   :  { %v1155_v20 = vmul.f32 0.03125, %v1151_v19 }
 0xdac   :  { %v1154_v22 = vpop.xlane.xlu0 %1153 }
 0xdad   :  { %v1157_v23 = vsub.f32 %v2088_v10, %v1155_v20  ;;  %v1156_v0 = vmul.f32 0.03125, %v1154_v22 }
 0xdaf   :  { %v1158_v24 = vsub.f32 %v2091_v16, %v1156_v0  ;;  %v1159_v26 = vmul.f32 %v1157_v23, %v1157_v23 }
 0xdb1   :  { %v1161_v1 = vsel %vm48_vm0, %v1159_v26, 0.0  ;;  %v1160_v27 = vmul.f32 %v1158_v24, %v1158_v24 }
 0xdb2   :  { %1162 = vadd.xlane.f32.xlu0 %v1161_v1 }
 0xdb3   :  { %v1164_v28 = vsel %vm48_vm0, %v1160_v27, 0.0 }
 0xdb6   :  { %1165 = vadd.xlane.f32.xlu0 %v1164_v28 }
 0xe3f   :  { %v1163_v33 = vpop.xlane.xlu0 %1162 }
 0xe40   :  { %v1167_v34 = vmul.f32 0.03125, %v1163_v33 }
 0xe42   :  { %v1169_v36 = vadd.f32 1e-05, %v1167_v34 }
 0xe43   :  { %v1166_v37 = vpop.xlane.xlu0 %1165 }
 0xe44   :  { %1745 = vrsqrt.f32 %v1169_v36  ;;  %v1168_v39 = vmul.f32 0.03125, %v1166_v37 }
 0xe46   :  { %v1170_v40 = vadd.f32 1e-05, %v1168_v39 }
 0xe48   :  { %1747 = vrsqrt.f32 %v1170_v40 }
 0xe4e   :  { %v1746_v35 = vpop.eup %1745 }
 0xe4f   :  { %v1173_v41 = vmul.f32 %v1746_v35, %v1157_v23 }
 0xe51   :  { %v1182_v44 = vmul.f32 %v1455_v42, %v1173_v41 }
 0xe52   :  { %v1748_v43 = vpop.eup %1747 }
 0xe53   :  { %v1174_v45 = vmul.f32 %v1748_v43, %v1158_v24  ;;  %v1191_v48 = vadd.f32 %v1456_v46, %v1182_v44 }
 0xe55   :  { %v1183_v47 = vmul.f32 %v1455_v42, %v1174_v45 }
 0xe57   :  { %v1192_v49 = vadd.f32 %v1456_v46, %v1183_v47 }
 0xe59   :  { %v1193_v50 = vpack.c.bf16 %v1192_v49, %v1191_v48 }
 0xe5b   :  { %1637 = vmatmul.mubr.msk.bf16.vlgmr.msra.gmra.mrb[40].mxu0 %vm48_vm0, %v1193_v50 }
 0xf2e   :  { %v1254_v54 = vpop.f32.mrb[40].mxu0 }
 0xf2f   :  { %v1255_v55 = vadd.f32 %v1457_v53, %v1254_v54  ;;  %v1638_v56 = vpop.f32.mrb[41].mxu0 }
 0xf30   :  { %v1257_v57 = vpop.f32.mrb[42].mxu0 }
 0xf31   :  { %v1258_v58 = vadd.f32 %v1457_v53, %v1257_v57  ;;  %v1639_v59 = vpop.f32.mrb[43].mxu0  ;;  %v1261_v60 = vmax.f32 %v1255_v55, 0.0 }
 0xf33   :  { %v1262_v61 = vmax.f32 %v1258_v58, 0.0 }
 0xf35   :  { %v1263_v62 = vpack.c.bf16 %v1262_v61, %v1261_v60 }
 0xf37   :  { %1657 = vmatmul.mubr.bf16.vlgmr.msra.gmra.mrb[32].mxu1 %v1263_v62 }
 0xf38   :  { %1760 = shalt.err (!%p1757_p4)
}
 0xf39   :  { %s1761_s18 = scalar_lea.hbm %s2196_s13, 256 }
 0xf3a   :  { %p1762_p5 = scmp.ne.s32.totalorder %s2196_s13, %s1761_s18  ;;  %p1765_p6 = scmp.lt.u32.totalorder %s1761_s18, %s2196_s13 }
 0xf3c   :  { %p1767_p7 = pnand %p1765_p6, %p1762_p5 }
 0xf3e   :  { %1770 = shalt.err (!%p1767_p7)
}
 0xf3f   :  { %s1814_s4 = smov 128   ;;  %v1461_v15 = vld [vmem:[%s2190_s7] ss:$0 sm:$0xff]  ;;  %vm1395_vm6 = vcmask 253952   ;;  %s1815_s7 = smov [#allocation2]  }
 0xf40   :  { %1421 = dma.vmem_to_hbm [thread:$0]  %s1416_s8, 256, %s2196_s13, [#allocation5], %s1814_s4, %s1814_s4, %s1810_s27  }
 0xf41   :  { %s1403_s13 = sshll.u32 %s1815_s7, 4  ;;  %s1404_s13 = int_to_ptr.vmem [resolvable:$true] %s1403_s13 }
 0xf42   :  { %s1771_s27 = scalar_lea.vmem %s1404_s13, 32  ;;  %p1776_p9 = scmp.lt.s32.totalorder %s1404_s13, %s1404_s13 }
 0xf43   :  { %p1772_p8 = scmp.ne.s32.totalorder %s1404_s13, %s1771_s27  ;;  %p1777_p10 = scmp.lt.s32.totalorder %s1771_s27, %s1771_s27 }
 0xf45   :  { %p1778_p11 = por %p1777_p10, %p1776_p9 }
 0xf47   :  { %p1779_p12 = pnand %p1778_p11, %p1772_p8 }
0x100a   :  { %v1369_v63 = vpop.f32.mrb[32].mxu1 }
0x100b   :  { %v1370_v2 = vadd.f32 %v1461_v15, %v1369_v63  ;;  %v1658_v3 = vpop.f32.mrb[33].mxu1 }
0x100c   :  { %v1372_v4 = vpop.f32.mrb[34].mxu1 }
0x100d   :  { %v1376_v5 = vadd.f32 %v1370_v2, %v2088_v10  ;;  %v1373_v6 = vadd.f32 %v1461_v15, %v1372_v4  ;;  %v1659_v25 = vpop.f32.mrb[35].mxu1 }
0x100f   :  { %v1378_v8 = vsel %vm48_vm0, %v1376_v5, 0.0  ;;  %v1377_v9 = vadd.f32 %v1373_v6, %v2091_v16 }
0x1010   :  { %v1379_v21 = vrot.slane %v1378_v8, 4 }
0x1011   :  { %v1385_v13 = vsel %vm48_vm0, %v1377_v9, 0.0 }
0x1012   :  { %v1380_v14 = vadd.f32 %v1379_v21, %v1378_v8  ;;  %v1386_v17 = vrot.slane %v1385_v13, 4 }
0x1014   :  { %v1381_v18 = vrot.slane %v1380_v14, 2  ;;  %v1387_v19 = vadd.f32 %v1386_v17, %v1385_v13 }
0x1016   :  { %v1382_v20 = vadd.f32 %v1381_v18, %v1380_v14  ;;  %v1388_v22 = vrot.slane %v1387_v19, 2 }
0x1018   :  { %v1383_v23 = vrot.slane %v1382_v20, 1  ;;  %v1389_v0 = vadd.f32 %v1388_v22, %v1387_v19 }
0x101a   :  { %v1390_v24 = vrot.slane %v1389_v0, 1  ;;  %v1384_v26 = vadd.f32 %v1383_v23, %v1382_v20 }
0x101c   :  { %v1391_v10 = vadd.f32 %v1390_v24, %v1389_v0  ;;  %v1393_v1 = vmul.f32 0.125, %v1384_v26 }
0x101e   :  { %v1394_v27 = vmul.f32 0.125, %v1391_v10  ;;  %1396 = vst.msk [vmem:[#allocation2] sm:$0x1] %vm1395_vm6, %v1393_v1 }
0x1020   :  { %1397 = vst.msk [vmem:[#allocation2 + $0x1] sm:$0x1] %vm1395_vm6, %v1394_v27 }
0x1021   :  { %1782 = shalt.err (!%p1779_p12)
}
0x1022   :  { %s1783_s30 = scalar_lea.hbm %s2195_s12, 32 }
0x1023   :  { %p1784_p13 = scmp.ne.s32.totalorder %s2195_s12, %s1783_s30  ;;  %p1787_p0 = scmp.lt.u32.totalorder %s1783_s30, %s2195_s12 }
0x1025   :  { %p1789_p1 = pnand %p1787_p0, %p1784_p13 }
0x1027   :  { %1792 = shalt.err (!%p1789_p1)
}
0x1028   :  { %s1816_s10 = smov 1  }
0x1029   :  { %1409 = dma.vmem_to_hbm [thread:$0]  %s1404_s13, 32, %s2195_s12, [#allocation3], %s1811_s28, %s1811_s28, %s1816_s10  }
0x102a   :  { %1793 = dma.done.wait [#allocation3], 32  }
0x102b   :  { %1794 = vsyncadd [#allocation3], 4294967264 }
0x102c   :  { %1795 = dma.done.wait [#allocation5], 256  }
0x102d   :  { %1796 = vsyncadd [#allocation5], 4294967040 }
0x102e   :  { %1428 = vsyncpa [#allocation3], 1 }
0x102f   :  { %1429 = vsyncpa [#allocation5], 1 }

</bundles_post_ra>
